<compile_context>
chip_gen: v7x
topology: tpu7x:2x2x1
jax: 0.10.0
libtpu: 0.0.40
codegen_flags: <defaults>
</compile_context>

<pallas_src>
import numpy as np
import jax
import jax.numpy as jnp
from jax.experimental import pallas as pl
from jax.experimental.pallas import tpu as pltpu


# ----------------------- kernel 1: GroupNorm statistics -----------------------
def _gn_stats_kernel(x_ref, s1_ref, s2_ref):
    """Accumulate per-channel sum / sum-of-squares as lane-dense (C, 128) partials."""
    @pl.when(pl.program_id(1) == 0)
    def _():
        s1_ref[...] = jnp.zeros_like(s1_ref)
        s2_ref[...] = jnp.zeros_like(s2_ref)

    xv = x_ref[...]                               # (C, N): one flattened frame
    n = xv.shape[1]
    p1 = jnp.zeros(s1_ref.shape, jnp.float32)
    p2 = jnp.zeros(s2_ref.shape, jnp.float32)
    for k in range(n // 128):                     # fold lanes by 128 (pure VPU adds)
        c = xv[:, k * 128:(k + 1) * 128]
        p1 = p1 + c
        p2 = p2 + c * c
    s1_ref[...] += p1
    s2_ref[...] += p2


# ------------------- kernel 2: normalize + SPADE modulation -------------------
def _make_spade_kernel(width, pad_in, pad_act, c_in, c_hid, c_out):
    """width = frame width W; pad_in/pad_act = left zero-pad of seg / actv buffers."""

    def kernel(x_ref, seg_ref, scale_ref, shift_ref,
               wf_sh_ref, b_sh_ref, wf_gb_ref, b_gb_ref,
               out_ref, actv_ref, col_ref):
        n = out_ref.shape[1]                      # H*W (flattened frame)

        # column index (w) of each flattened pixel -> horizontal-border masks
        col_idx = jax.lax.broadcasted_iota(jnp.int32, (1, n), 1) % width
        mask_l = (col_idx > 0).astype(jnp.float32)            # taps reading column w-1
        mask_r = (col_idx < width - 1).astype(jnp.float32)    # taps reading column w+1

        def im2col(src_ref, pad_left, c_src):
            """Scatter the 9 shifted, border-masked taps of a zero-padded flat frame
            into col_ref rows [t*c_src, (t+1)*c_src).  Vertical borders are handled by
            the zero padding; horizontal wrap is handled by mask_l / mask_r."""
            for ky in range(3):
                for kx in range(3):
                    t = ky * 3 + kx
                    off = pad_left + (ky - 1) * width + (kx - 1)
                    sl = src_ref[:, off:off + n]              # (C_src, N) shifted tap
                    if kx == 0:
                        sl = sl * mask_l
                    elif kx == 2:
                        sl = sl * mask_r
                    col_ref[t * c_src:(t + 1) * c_src, :] = sl

        # ---- shared MLP: (1,3,3) conv + ReLU on the nearest-resized segmap ----
        im2col(seg_ref, pad_in, c_in)
        actv = jnp.dot(wf_sh_ref[...], col_ref[:9 * c_in, :],
                       preferred_element_type=jnp.float32) + b_sh_ref[...]
        actv = jnp.maximum(actv, 0.0)

        # re-pad the activation (zero borders) through VMEM scratch; pad_act = 128
        # so every scratch store below is lane-aligned.
        zero_pad = jnp.zeros((c_hid, pad_act), jnp.float32)
        actv_ref[:, :pad_act] = zero_pad
        actv_ref[:, pad_act + n:] = zero_pad                  # right pad is 128 wide too
        actv_ref[:, pad_act:pad_act + n] = actv

        # ---- fused gamma/beta conv (output channels concatenated) ----
        im2col(actv_ref, pad_act, c_hid)
        gb = jnp.dot(wf_gb_ref[...], col_ref[:9 * c_hid, :],
                     preferred_element_type=jnp.float32) + b_gb_ref[...]
        gamma = gb[:c_out, :]                     # "+1" already folded into the bias
        beta = gb[c_out:, :]

        # ---- GroupNorm (affine-free) normalize + SPADE modulation ----
        x_norm = x_ref[...] * scale_ref[...] + shift_ref[...]
        out_ref[...] = x_norm * gamma + beta

    return kernel


# ------------------------------- glue helpers ---------------------------------
def _nearest_resize_3d(seg, out_size):
    """F.interpolate(mode='nearest') for NCDHW: src index = floor(dst * in / out)."""
    d, h, w = seg.shape[2:]
    do, ho, wo = out_size
    di = (jnp.arange(do) * d) // do
    hi = (jnp.arange(ho) * h) // ho
    wi = (jnp.arange(wo) * w) // wo
    return seg[:, :, di][:, :, :, hi][:, :, :, :, wi]


def spade_group_norm_3d(x, segmap, params, *, groups=8, eps=1e-5):
    B, C, F_, H, W = x.shape
    N = H * W
    assert N % 128 == 0, "flattened frame H*W must be a multiple of 128"
    assert C % groups == 0 and C % 8 == 0
    assert W + 1 <= 128
    Cg = C // groups
    C_in = segmap.shape[1]
    C_hid = params["w_shared"].shape[0]
    assert C_in % 8 == 0 and C_hid % 8 == 0

    f32 = jnp.float32
    pad_in = W + 1                                         # minimal zero pad for seg stream
    npad_in = pl.cdiv(N + 2 * (W + 1), 128) * 128
    pad_act = 128                                          # aligned pad for VMEM scratch
    npad_act = N + 2 * pad_act

    # lane-dense (B, F, C, N) layout: frame pixels on lanes, channels on sublanes
    x_bfcn = jnp.transpose(x, (0, 2, 1, 3, 4)).reshape(B, F_, C, N).astype(f32)

    # ----------------- pass 1: GroupNorm statistics (Pallas) -----------------
    sq = pl.Squeezed()
    s1, s2 = pl.pallas_call(
        _gn_stats_kernel,
        out_shape=(jax.ShapeDtypeStruct((B, C, 128), f32),
                   jax.ShapeDtypeStruct((B, C, 128), f32)),
        grid=(B, F_),
        in_specs=[pl.BlockSpec((sq, sq, C, N), lambda b, f: (b, f, 0, 0))],
        out_specs=(pl.BlockSpec((sq, C, 128), lambda b, f: (b, 0, 0)),
                   pl.BlockSpec((sq, C, 128), lambda b, f: (b, 0, 0))),
        compiler_params=pltpu.CompilerParams(
            dimension_semantics=("parallel", "arbitrary")),
    )(x_bfcn)

    # tiny (B, C)-sized finish in JAX: lane reduce, group pool, mean / rstd
    ch_sum = jnp.sum(s1, axis=-1)                          # (B, C)
    ch_sqs = jnp.sum(s2, axis=-1)
    cnt = f32(Cg * F_ * N)
    g_sum = ch_sum.reshape(B, groups, Cg).sum(-1)          # (B, G)
    g_sqs = ch_sqs.reshape(B, groups, Cg).sum(-1)
    mean = g_sum / cnt
    var = g_sqs / cnt - mean * mean
    rstd = jax.lax.rsqrt(var + eps)
    scale = jnp.repeat(rstd, Cg, axis=1)[..., None].astype(f32)           # (B, C, 1)
    shift = jnp.repeat(-mean * rstd, Cg, axis=1)[..., None].astype(f32)   # (B, C, 1)

    # --------- segmap: nearest resize (gather) + flatten + zero pad ----------
    # TODO(synk): nearest-neighbour F.interpolate is a pure index gather; it is done
    # in the JAX wrapper rather than inside the Pallas kernel.
    seg = _nearest_resize_3d(segmap, (F_, H, W)).astype(f32)              # (B, C_in, F, H, W)
    seg_flat = jnp.transpose(seg, (0, 2, 1, 3, 4)).reshape(B, F_, C_in, N)
    seg_pad = jnp.pad(seg_flat,
                      ((0, 0), (0, 0), (0, 0), (pad_in, npad_in - N - pad_in)))

    # --- conv weights flattened to match the im2col row layout [t*C_src + c] ---
    def flat_w(w):                                         # (O, I, 1, 3, 3) -> (O, 9*I)
        O, I = w.shape[0], w.shape[1]
        return jnp.transpose(w[:, :, 0], (0, 2, 3, 1)).reshape(O, 9 * I)

    wf_sh = flat_w(params["w_shared"]).astype(f32)                         # (C_hid, 9*C_in)
    b_sh = params["b_shared"].reshape(C_hid, 1).astype(f32)
    wf_gb = jnp.concatenate([flat_w(params["w_gamma"]),
                             flat_w(params["w_beta"])], axis=0).astype(f32)  # (2C, 9*C_hid)
    b_gb = jnp.concatenate([params["b_gamma"] + 1.0,      # fold the (1 + gamma) term
                            params["b_beta"]]).reshape(2 * C, 1).astype(f32)

    col_rows = 9 * max(C_in, C_hid)

    # ----------------- pass 2: normalize + SPADE (Pallas) --------------------
    kernel = _make_spade_kernel(W, pad_in, pad_act, C_in, C_hid, C)
    out_bfcn = pl.pallas_call(
        kernel,
        out_shape=jax.ShapeDtypeStruct((B, F_, C, N), f32),
        grid=(B, F_),
        in_specs=[
            pl.BlockSpec((sq, sq, C, N), lambda b, f: (b, f, 0, 0)),          # x
            pl.BlockSpec((sq, sq, C_in, npad_in), lambda b, f: (b, f, 0, 0)), # seg (padded)
            pl.BlockSpec((sq, C, 1), lambda b, f: (b, 0, 0)),                 # scale (rstd)
            pl.BlockSpec((sq, C, 1), lambda b, f: (b, 0, 0)),                 # shift (-mean*rstd)
            pl.BlockSpec((C_hid, 9 * C_in), lambda b, f: (0, 0)),             # shared-conv W
            pl.BlockSpec((C_hid, 1), lambda b, f: (0, 0)),                    # shared bias
            pl.BlockSpec((2 * C, 9 * C_hid), lambda b, f: (0, 0)),            # gamma|beta W
            pl.BlockSpec((2 * C, 1), lambda b, f: (0, 0)),                    # gamma|beta bias
        ],
        out_specs=pl.BlockSpec((sq, sq, C, N), lambda b, f: (b, f, 0, 0)),
        scratch_shapes=[pltpu.VMEM((C_hid, npad_act), f32),                   # padded actv
                        pltpu.VMEM((col_rows, N), f32)],                      # im2col buffer
        compiler_params=pltpu.CompilerParams(
            dimension_semantics=("parallel", "parallel")),
    )(x_bfcn, seg_pad, scale, shift, wf_sh, b_sh, wf_gb, b_gb)

    return out_bfcn.reshape(B, F_, C, H, W).transpose(0, 2, 1, 3, 4)


# ------------------------------ reference (JAX) -------------------------------
def reference_forward(x, segmap, params, *, groups=8, eps=1e-5):
    B, C, F_, H, W = x.shape
    xg = x.reshape(B, groups, C // groups, F_, H, W).astype(jnp.float32)
    mean = jnp.mean(xg, axis=(2, 3, 4, 5), keepdims=True)
    var = jnp.mean((xg - mean) ** 2, axis=(2, 3, 4, 5), keepdims=True)
    xn = ((xg - mean) * jax.lax.rsqrt(var + eps)).reshape(B, C, F_, H, W)

    seg = _nearest_resize_3d(segmap, (F_, H, W)).astype(jnp.float32)

    def conv(inp, w, b):
        out = jax.lax.conv_general_dilated(
            inp, w, window_strides=(1, 1, 1),
            padding=((0, 0), (1, 1), (1, 1)),
            dimension_numbers=("NCDHW", "OIDHW", "NCDHW"),
            precision=jax.lax.Precision.HIGHEST)
        return out + b.reshape(1, -1, 1, 1, 1)

    actv = jax.nn.relu(conv(seg, params["w_shared"], params["b_shared"]))
    gamma = conv(actv, params["w_gamma"], params["b_gamma"])
    beta = conv(actv, params["w_beta"], params["b_beta"])
    return xn * (1.0 + gamma) + beta


# ------------------------------------ main -------------------------------------
if __name__ == "__main__":
    B, C_OUT, F_, H, W = 2, 16, 4, 16, 16          # x: (b, dim_out, f, h, w)
    C_IN, C_HID, GROUPS, EPS = 8, 32, 8, 1e-5      # spade_input_nc, dim_hidden

    key = jax.random.PRNGKey(0)
    ks = jax.random.split(key, 8)
    x = jax.random.normal(ks[0], (B, C_OUT, F_, H, W), jnp.float32)
    segmap = jax.random.uniform(ks[1], (B, C_IN, 2, 8, 8), jnp.float32)   # low-res semantic map

    params = {
        "w_shared": 0.2 * jax.random.normal(ks[2], (C_HID, C_IN, 1, 3, 3), jnp.float32),
        "b_shared": 0.1 * jax.random.normal(ks[3], (C_HID,), jnp.float32),
        "w_gamma": 0.1 * jax.random.normal(ks[4], (C_OUT, C_HID, 1, 3, 3), jnp.float32),
        "b_gamma": 0.1 * jax.random.normal(ks[5], (C_OUT,), jnp.float32),
        "w_beta": 0.1 * jax.random.normal(ks[6], (C_OUT, C_HID, 1, 3, 3), jnp.float32),
        "b_beta": 0.1 * jax.random.normal(ks[7], (C_OUT,), jnp.float32),
    }

    fwd = jax.jit(lambda xx, ss, pp: spade_group_norm_3d(xx, ss, pp,
                                                         groups=GROUPS, eps=EPS))
    out = jax.block_until_ready(fwd(x, segmap, params))

    ref = reference_forward(x, segmap, params, groups=GROUPS, eps=EPS)
    np.testing.assert_allclose(np.asarray(out), np.asarray(ref), rtol=1e-2, atol=1e-2)

    print("KERNEL_OK")
</pallas_src>

<mosaic_0001>
module attributes {stable_mosaic.version = 11 : i64} {
  func.func @_gn_stats_kernel(%arg0: i32, %arg1: i32, %arg2: memref<1x1x16x256xf32, #tpu.memory_space<vmem>>, %arg3: memref<1x16x128xf32, #tpu.memory_space<vmem>>, %arg4: memref<1x16x128xf32, #tpu.memory_space<vmem>>) attributes {dimension_semantics = [#tpu.dimension_semantics<parallel>, #tpu.dimension_semantics<arbitrary>], iteration_bounds = array<i64: 2, 4>, scalar_prefetch = 0 : i64, scratch_operands = 0 : i64, tpu.core_type = #tpu.core_type<tc>, window_params = [{transform_indices = @transform_0, window_bounds = array<i64: 1, 1, 16, 256>}, {transform_indices = @transform_1, window_bounds = array<i64: 1, 16, 128>}, {transform_indices = @transform_2, window_bounds = array<i64: 1, 16, 128>}]} {
    %c0_i32 = arith.constant 0 : i32
    %0 = arith.cmpi eq, %arg1, %c0_i32 : i32
    %1 = arith.extui %0 : i1 to i32
    %c0_i32_0 = arith.constant 0 : i32
    %2 = arith.cmpi ne, %1, %c0_i32_0 : i32
    scf.if %2 {
      %cst_17 = arith.constant 0.000000e+00 : f32
      %27 = vector.broadcast %cst_17 : f32 to vector<16x128xf32>
      %c0_18 = arith.constant 0 : index
      %c0_19 = arith.constant 0 : index
      %c0_20 = arith.constant 0 : index
      %28 = vector.load %arg3[%c0_18, %c0_19, %c0_20] : memref<1x16x128xf32, #tpu.memory_space<vmem>>, vector<1x16x128xf32>
      %29 = vector.shape_cast %28 : vector<1x16x128xf32> to vector<16x128xf32>
      %30 = vector.shape_cast %27 : vector<16x128xf32> to vector<1x16x128xf32>
      tpu.vector_store %arg3[%c0_18, %c0_19, %c0_20], %30 {strides = array<i32>} : memref<1x16x128xf32, #tpu.memory_space<vmem>>, vector<1x16x128xf32>,
      %cst_21 = arith.constant 0.000000e+00 : f32
      %31 = vector.broadcast %cst_21 : f32 to vector<16x128xf32>
      %c0_22 = arith.constant 0 : index
      %c0_23 = arith.constant 0 : index
      %c0_24 = arith.constant 0 : index
      %32 = vector.load %arg4[%c0_22, %c0_23, %c0_24] : memref<1x16x128xf32, #tpu.memory_space<vmem>>, vector<1x16x128xf32>
      %33 = vector.shape_cast %32 : vector<1x16x128xf32> to vector<16x128xf32>
      %34 = vector.shape_cast %31 : vector<16x128xf32> to vector<1x16x128xf32>
      tpu.vector_store %arg4[%c0_22, %c0_23, %c0_24], %34 {strides = array<i32>} : memref<1x16x128xf32, #tpu.memory_space<vmem>>, vector<1x16x128xf32>,
    } else {
    }
    %c0 = arith.constant 0 : index
    %c0_1 = arith.constant 0 : index
    %c0_2 = arith.constant 0 : index
    %c0_3 = arith.constant 0 : index
    %3 = vector.load %arg2[%c0, %c0_1, %c0_2, %c0_3] : memref<1x1x16x256xf32, #tpu.memory_space<vmem>>, vector<1x1x16x256xf32>
    %4 = vector.shape_cast %3 : vector<1x1x16x256xf32> to vector<16x256xf32>
    %cst = arith.constant 0.000000e+00 : f32
    %5 = vector.broadcast %cst : f32 to vector<16x128xf32>
    %cst_4 = arith.constant 0.000000e+00 : f32
    %6 = vector.broadcast %cst_4 : f32 to vector<16x128xf32>
    %7 = vector.extract_strided_slice %4 {offsets = [0, 0], sizes = [16, 128], strides = [1, 1]} : vector<16x256xf32> to vector<16x128xf32>
    %8 = arith.addf %5, %7 : vector<16x128xf32>
    %9 = arith.mulf %7, %7 : vector<16x128xf32>
    %10 = arith.addf %6, %9 : vector<16x128xf32>
    %11 = vector.extract_strided_slice %4 {offsets = [0, 128], sizes = [16, 128], strides = [1, 1]} : vector<16x256xf32> to vector<16x128xf32>
    %12 = arith.addf %8, %11 : vector<16x128xf32>
    %13 = arith.mulf %11, %11 : vector<16x128xf32>
    %14 = arith.addf %10, %13 : vector<16x128xf32>
    %c0_5 = arith.constant 0 : index
    %c0_6 = arith.constant 0 : index
    %c0_7 = arith.constant 0 : index
    %15 = vector.load %arg3[%c0_5, %c0_6, %c0_7] : memref<1x16x128xf32, #tpu.memory_space<vmem>>, vector<1x16x128xf32>
    %16 = vector.shape_cast %15 : vector<1x16x128xf32> to vector<16x128xf32>
    %17 = arith.addf %16, %12 : vector<16x128xf32>
    %c0_8 = arith.constant 0 : index
    %c0_9 = arith.constant 0 : index
    %c0_10 = arith.constant 0 : index
    %18 = vector.load %arg3[%c0_8, %c0_9, %c0_10] : memref<1x16x128xf32, #tpu.memory_space<vmem>>, vector<1x16x128xf32>
    %19 = vector.shape_cast %18 : vector<1x16x128xf32> to vector<16x128xf32>
    %20 = vector.shape_cast %17 : vector<16x128xf32> to vector<1x16x128xf32>
    tpu.vector_store %arg3[%c0_8, %c0_9, %c0_10], %20 {strides = array<i32>} : memref<1x16x128xf32, #tpu.memory_space<vmem>>, vector<1x16x128xf32>,
    %c0_11 = arith.constant 0 : index
    %c0_12 = arith.constant 0 : index
    %c0_13 = arith.constant 0 : index
    %21 = vector.load %arg4[%c0_11, %c0_12, %c0_13] : memref<1x16x128xf32, #tpu.memory_space<vmem>>, vector<1x16x128xf32>
    %22 = vector.shape_cast %21 : vector<1x16x128xf32> to vector<16x128xf32>
    %23 = arith.addf %22, %14 : vector<16x128xf32>
    %c0_14 = arith.constant 0 : index
    %c0_15 = arith.constant 0 : index
    %c0_16 = arith.constant 0 : index
    %24 = vector.load %arg4[%c0_14, %c0_15, %c0_16] : memref<1x16x128xf32, #tpu.memory_space<vmem>>, vector<1x16x128xf32>
    %25 = vector.shape_cast %24 : vector<1x16x128xf32> to vector<16x128xf32>
    %26 = vector.shape_cast %23 : vector<16x128xf32> to vector<1x16x128xf32>
    tpu.vector_store %arg4[%c0_14, %c0_15, %c0_16], %26 {strides = array<i32>} : memref<1x16x128xf32, #tpu.memory_space<vmem>>, vector<1x16x128xf32>,
    return
  }
  func.func @transform_0(%arg0: i32, %arg1: i32) -> (i32, i32, i32, i32) {
    %c0_i32 = arith.constant 0 : i32
    %c0_i32_0 = arith.constant 0 : i32
    %c0_i32_1 = arith.constant 0 : i32
    return %arg0, %arg1, %c0_i32, %c0_i32_0 : i32, i32, i32, i32
  }
  func.func @transform_1(%arg0: i32, %arg1: i32) -> (i32, i32, i32) {
    %c0_i32 = arith.constant 0 : i32
    %c0_i32_0 = arith.constant 0 : i32
    %c0_i32_1 = arith.constant 0 : i32
    return %arg0, %c0_i32, %c0_i32_0 : i32, i32, i32
  }
  func.func @transform_2(%arg0: i32, %arg1: i32) -> (i32, i32, i32) {
    %c0_i32 = arith.constant 0 : i32
    %c0_i32_0 = arith.constant 0 : i32
    %c0_i32_1 = arith.constant 0 : i32
    return %arg0, %c0_i32, %c0_i32_0 : i32, i32, i32
  }
}

module attributes {stable_mosaic.version = 11 : i64} {
  func.func @kernel(%arg0: i32, %arg1: i32, %arg2: memref<1x1x16x256xf32, #tpu.memory_space<vmem>>, %arg3: memref<1x1x8x384xf32, #tpu.memory_space<vmem>>, %arg4: memref<1x16x1xf32, #tpu.memory_space<vmem>>, %arg5: memref<1x16x1xf32, #tpu.memory_space<vmem>>, %arg6: memref<32x72xf32, #tpu.memory_space<vmem>>, %arg7: memref<32x1xf32, #tpu.memory_space<vmem>>, %arg8: memref<32x288xf32, #tpu.memory_space<vmem>>, %arg9: memref<32x1xf32, #tpu.memory_space<vmem>>, %arg10: memref<1x1x16x256xf32, #tpu.memory_space<vmem>>, %arg11: memref<32x512xf32, #tpu.memory_space<vmem>>, %arg12: memref<288x256xf32, #tpu.memory_space<vmem>>) attributes {dimension_semantics = [#tpu.dimension_semantics<parallel>, #tpu.dimension_semantics<parallel>], iteration_bounds = array<i64: 2, 4>, scalar_prefetch = 0 : i64, scratch_operands = 2 : i64, tpu.core_type = #tpu.core_type<tc>, window_params = [{transform_indices = @transform_0, window_bounds = array<i64: 1, 1, 16, 256>}, {transform_indices = @transform_1, window_bounds = array<i64: 1, 1, 8, 384>}, {transform_indices = @transform_2, window_bounds = array<i64: 1, 16, 1>}, {transform_indices = @transform_3, window_bounds = array<i64: 1, 16, 1>}, {pipeline_mode = #tpu.pipeline_mode<synchronous>, transform_indices = @transform_4, window_bounds = array<i64: 32, 72>}, {pipeline_mode = #tpu.pipeline_mode<synchronous>, transform_indices = @transform_5, window_bounds = array<i64: 32, 1>}, {pipeline_mode = #tpu.pipeline_mode<synchronous>, transform_indices = @transform_6, window_bounds = array<i64: 32, 288>}, {pipeline_mode = #tpu.pipeline_mode<synchronous>, transform_indices = @transform_7, window_bounds = array<i64: 32, 1>}, {transform_indices = @transform_8, window_bounds = array<i64: 1, 1, 16, 256>}]} {
    %0 = tpu.iota {dimensions = array<i32: 1>} : vector<1x256xi32>
    %c16_i32 = arith.constant 16 : i32
    %c0_i32 = arith.constant 0 : i32
    %1 = arith.cmpi eq, %c16_i32, %c0_i32 : i32
    %c1_i32 = arith.constant 1 : i32
    %2 = arith.select %1, %c1_i32, %c16_i32 : i32
    %3 = vector.broadcast %2 : i32 to vector<1x256xi32>
    %4 = arith.remsi %0, %3 : vector<1x256xi32>
    %c0_i32_0 = arith.constant 0 : i32
    %5 = vector.broadcast %c0_i32_0 : i32 to vector<1x256xi32>
    %6 = arith.cmpi ne, %4, %5 : vector<1x256xi32>
    %c0_i32_1 = arith.constant 0 : i32
    %7 = vector.broadcast %c0_i32_1 : i32 to vector<1x256xi32>
    %8 = arith.cmpi slt, %4, %7 : vector<1x256xi32>
    %c0_i32_2 = arith.constant 0 : i32
    %9 = arith.cmpi slt, %2, %c0_i32_2 : i32
    %10 = vector.broadcast %9 : i1 to vector<1x256xi1>
    %11 = vector.broadcast %10 : vector<1x256xi1> to vector<1x256xi1>
    %12 = arith.xori %8, %11 : vector<1x256xi1>
    %13 = arith.andi %12, %6 : vector<1x256xi1>
    %14 = vector.broadcast %2 : i32 to vector<1x256xi32>
    %15 = arith.addi %4, %14 : vector<1x256xi32>
    %16 = arith.select %13, %15, %4 : vector<1x256xi1>, vector<1x256xi32>
    %c0_i32_3 = arith.constant 0 : i32
    %17 = vector.broadcast %c0_i32_3 : i32 to vector<1x256xi32>
    %18 = arith.cmpi sgt, %16, %17 : vector<1x256xi32>
    %19 = arith.extui %18 : vector<1x256xi1> to vector<1x256xi32>
    %20 = arith.sitofp %19 : vector<1x256xi32> to vector<1x256xf32>
    %c15_i32 = arith.constant 15 : i32
    %21 = vector.broadcast %c15_i32 : i32 to vector<1x256xi32>
    %22 = arith.cmpi slt, %16, %21 : vector<1x256xi32>
    %23 = arith.extui %22 : vector<1x256xi1> to vector<1x256xi32>
    %24 = arith.sitofp %23 : vector<1x256xi32> to vector<1x256xf32>
    %c0 = arith.constant 0 : index
    %c0_4 = arith.constant 0 : index
    %c0_5 = arith.constant 0 : index
    %c0_6 = arith.constant 0 : index
    %25 = vector.load %arg3[%c0, %c0_4, %c0_5, %c0_6] : memref<1x1x8x384xf32, #tpu.memory_space<vmem>>, vector<1x1x8x256xf32>
    %26 = vector.shape_cast %25 : vector<1x1x8x256xf32> to vector<8x256xf32>
    %27 = vector.broadcast %20 : vector<1x256xf32> to vector<8x256xf32>
    %28 = arith.mulf %26, %27 : vector<8x256xf32>
    %c0_7 = arith.constant 0 : index
    %c0_8 = arith.constant 0 : index
    %29 = vector.load %arg12[%c0_7, %c0_8] : memref<288x256xf32, #tpu.memory_space<vmem>>, vector<8x256xf32>
    tpu.vector_store %arg12[%c0_7, %c0_8], %28 {strides = array<i32>} : memref<288x256xf32, #tpu.memory_space<vmem>>, vector<8x256xf32>,
    %c0_9 = arith.constant 0 : index
    %c0_10 = arith.constant 0 : index
    %c0_11 = arith.constant 0 : index
    %c1 = arith.constant 1 : index
    %30 = vector.load %arg3[%c0_9, %c0_10, %c0_11, %c1] : memref<1x1x8x384xf32, #tpu.memory_space<vmem>>, vector<1x1x8x256xf32>
    %31 = vector.shape_cast %30 : vector<1x1x8x256xf32> to vector<8x256xf32>
    %c8 = arith.constant 8 : index
    %c0_12 = arith.constant 0 : index
    %32 = vector.load %arg12[%c8, %c0_12] : memref<288x256xf32, #tpu.memory_space<vmem>>, vector<8x256xf32>
    tpu.vector_store %arg12[%c8, %c0_12], %31 {strides = array<i32>} : memref<288x256xf32, #tpu.memory_space<vmem>>, vector<8x256xf32>,
    %c0_13 = arith.constant 0 : index
    %c0_14 = arith.constant 0 : index
    %c0_15 = arith.constant 0 : index
    %c2 = arith.constant 2 : index
    %33 = vector.load %arg3[%c0_13, %c0_14, %c0_15, %c2] : memref<1x1x8x384xf32, #tpu.memory_space<vmem>>, vector<1x1x8x256xf32>
    %34 = vector.shape_cast %33 : vector<1x1x8x256xf32> to vector<8x256xf32>
    %35 = vector.broadcast %24 : vector<1x256xf32> to vector<8x256xf32>
    %36 = arith.mulf %34, %35 : vector<8x256xf32>
    %c16 = arith.constant 16 : index
    %c0_16 = arith.constant 0 : index
    %37 = vector.load %arg12[%c16, %c0_16] : memref<288x256xf32, #tpu.memory_space<vmem>>, vector<8x256xf32>
    tpu.vector_store %arg12[%c16, %c0_16], %36 {strides = array<i32>} : memref<288x256xf32, #tpu.memory_space<vmem>>, vector<8x256xf32>,
    %c0_17 = arith.constant 0 : index
    %c0_18 = arith.constant 0 : index
    %c0_19 = arith.constant 0 : index
    %c16_20 = arith.constant 16 : index
    %38 = vector.load %arg3[%c0_17, %c0_18, %c0_19, %c16_20] : memref<1x1x8x384xf32, #tpu.memory_space<vmem>>, vector<1x1x8x256xf32>
    %39 = vector.shape_cast %38 : vector<1x1x8x256xf32> to vector<8x256xf32>
    %40 = vector.broadcast %20 : vector<1x256xf32> to vector<8x256xf32>
    %41 = arith.mulf %39, %40 : vector<8x256xf32>
    %c24 = arith.constant 24 : index
    %c0_21 = arith.constant 0 : index
    %42 = vector.load %arg12[%c24, %c0_21] : memref<288x256xf32, #tpu.memory_space<vmem>>, vector<8x256xf32>
    tpu.vector_store %arg12[%c24, %c0_21], %41 {strides = array<i32>} : memref<288x256xf32, #tpu.memory_space<vmem>>, vector<8x256xf32>,
    %c0_22 = arith.constant 0 : index
    %c0_23 = arith.constant 0 : index
    %c0_24 = arith.constant 0 : index
    %c17 = arith.constant 17 : index
    %43 = vector.load %arg3[%c0_22, %c0_23, %c0_24, %c17] : memref<1x1x8x384xf32, #tpu.memory_space<vmem>>, vector<1x1x8x256xf32>
    %44 = vector.shape_cast %43 : vector<1x1x8x256xf32> to vector<8x256xf32>
    %c32 = arith.constant 32 : index
    %c0_25 = arith.constant 0 : index
    %45 = vector.load %arg12[%c32, %c0_25] : memref<288x256xf32, #tpu.memory_space<vmem>>, vector<8x256xf32>
    tpu.vector_store %arg12[%c32, %c0_25], %44 {strides = array<i32>} : memref<288x256xf32, #tpu.memory_space<vmem>>, vector<8x256xf32>,
    %c0_26 = arith.constant 0 : index
    %c0_27 = arith.constant 0 : index
    %c0_28 = arith.constant 0 : index
    %c18 = arith.constant 18 : index
    %46 = vector.load %arg3[%c0_26, %c0_27, %c0_28, %c18] : memref<1x1x8x384xf32, #tpu.memory_space<vmem>>, vector<1x1x8x256xf32>
    %47 = vector.shape_cast %46 : vector<1x1x8x256xf32> to vector<8x256xf32>
    %48 = vector.broadcast %24 : vector<1x256xf32> to vector<8x256xf32>
    %49 = arith.mulf %47, %48 : vector<8x256xf32>
    %c40 = arith.constant 40 : index
    %c0_29 = arith.constant 0 : index
    %50 = vector.load %arg12[%c40, %c0_29] : memref<288x256xf32, #tpu.memory_space<vmem>>, vector<8x256xf32>
    tpu.vector_store %arg12[%c40, %c0_29], %49 {strides = array<i32>} : memref<288x256xf32, #tpu.memory_space<vmem>>, vector<8x256xf32>,
    %c0_30 = arith.constant 0 : index
    %c0_31 = arith.constant 0 : index
    %c0_32 = arith.constant 0 : index
    %c32_33 = arith.constant 32 : index
    %51 = vector.load %arg3[%c0_30, %c0_31, %c0_32, %c32_33] : memref<1x1x8x384xf32, #tpu.memory_space<vmem>>, vector<1x1x8x256xf32>
    %52 = vector.shape_cast %51 : vector<1x1x8x256xf32> to vector<8x256xf32>
    %53 = vector.broadcast %20 : vector<1x256xf32> to vector<8x256xf32>
    %54 = arith.mulf %52, %53 : vector<8x256xf32>
    %c48 = arith.constant 48 : index
    %c0_34 = arith.constant 0 : index
    %55 = vector.load %arg12[%c48, %c0_34] : memref<288x256xf32, #tpu.memory_space<vmem>>, vector<8x256xf32>
    tpu.vector_store %arg12[%c48, %c0_34], %54 {strides = array<i32>} : memref<288x256xf32, #tpu.memory_space<vmem>>, vector<8x256xf32>,
    %c0_35 = arith.constant 0 : index
    %c0_36 = arith.constant 0 : index
    %c0_37 = arith.constant 0 : index
    %c33 = arith.constant 33 : index
    %56 = vector.load %arg3[%c0_35, %c0_36, %c0_37, %c33] : memref<1x1x8x384xf32, #tpu.memory_space<vmem>>, vector<1x1x8x256xf32>
    %57 = vector.shape_cast %56 : vector<1x1x8x256xf32> to vector<8x256xf32>
    %c56 = arith.constant 56 : index
    %c0_38 = arith.constant 0 : index
    %58 = vector.load %arg12[%c56, %c0_38] : memref<288x256xf32, #tpu.memory_space<vmem>>, vector<8x256xf32>
    tpu.vector_store %arg12[%c56, %c0_38], %57 {strides = array<i32>} : memref<288x256xf32, #tpu.memory_space<vmem>>, vector<8x256xf32>,
    %c0_39 = arith.constant 0 : index
    %c0_40 = arith.constant 0 : index
    %c0_41 = arith.constant 0 : index
    %c34 = arith.constant 34 : index
    %59 = vector.load %arg3[%c0_39, %c0_40, %c0_41, %c34] : memref<1x1x8x384xf32, #tpu.memory_space<vmem>>, vector<1x1x8x256xf32>
    %60 = vector.shape_cast %59 : vector<1x1x8x256xf32> to vector<8x256xf32>
    %61 = vector.broadcast %24 : vector<1x256xf32> to vector<8x256xf32>
    %62 = arith.mulf %60, %61 : vector<8x256xf32>
    %c64 = arith.constant 64 : index
    %c0_42 = arith.constant 0 : index
    %63 = vector.load %arg12[%c64, %c0_42] : memref<288x256xf32, #tpu.memory_space<vmem>>, vector<8x256xf32>
    tpu.vector_store %arg12[%c64, %c0_42], %62 {strides = array<i32>} : memref<288x256xf32, #tpu.memory_space<vmem>>, vector<8x256xf32>,
    %c0_43 = arith.constant 0 : index
    %c0_44 = arith.constant 0 : index
    %64 = vector.load %arg6[%c0_43, %c0_44] : memref<32x72xf32, #tpu.memory_space<vmem>>, vector<32x72xf32>
    %c0_45 = arith.constant 0 : index
    %c0_46 = arith.constant 0 : index
    %65 = vector.load %arg12[%c0_45, %c0_46] : memref<288x256xf32, #tpu.memory_space<vmem>>, vector<72x256xf32>
    %cst = arith.constant dense<0.000000e+00> : vector<32x256xf32>
    %66 = tpu.matmul %64, %65, %cst {dimension_numbers = #tpu.dot_dimension_numbers<[1], [0], [0], [1], [0, 0, 1, 1], [], []>} : vector<32x72xf32>, vector<72x256xf32>, vector<32x256xf32> -> vector<32x256xf32>
    %c0_47 = arith.constant 0 : index
    %c0_48 = arith.constant 0 : index
    %67 = vector.load %arg7[%c0_47, %c0_48] : memref<32x1xf32, #tpu.memory_space<vmem>>, vector<32x1xf32>
    %68 = vector.broadcast %67 : vector<32x1xf32> to vector<32x256xf32>
    %69 = arith.addf %66, %68 : vector<32x256xf32>
    %cst_49 = arith.constant 0.000000e+00 : f32
    %70 = vector.broadcast %cst_49 : f32 to vector<32x256xf32>
    %71 = arith.maximumf %69, %70 : vector<32x256xf32>
    %cst_50 = arith.constant 0.000000e+00 : f32
    %72 = vector.broadcast %cst_50 : f32 to vector<32x128xf32>
    %c0_51 = arith.constant 0 : index
    %c0_52 = arith.constant 0 : index
    %73 = vector.load %arg11[%c0_51, %c0_52] : memref<32x512xf32, #tpu.memory_space<vmem>>, vector<32x128xf32>
    tpu.vector_store %arg11[%c0_51, %c0_52], %72 {strides = array<i32>} : memref<32x512xf32, #tpu.memory_space<vmem>>, vector<32x128xf32>,
    %c0_53 = arith.constant 0 : index
    %c384 = arith.constant 384 : index
    %74 = vector.load %arg11[%c0_53, %c384] : memref<32x512xf32, #tpu.memory_space<vmem>>, vector<32x128xf32>
    tpu.vector_store %arg11[%c0_53, %c384], %72 {strides = array<i32>} : memref<32x512xf32, #tpu.memory_space<vmem>>, vector<32x128xf32>,
    %c0_54 = arith.constant 0 : index
    %c128 = arith.constant 128 : index
    %75 = vector.load %arg11[%c0_54, %c128] : memref<32x512xf32, #tpu.memory_space<vmem>>, vector<32x256xf32>
    tpu.vector_store %arg11[%c0_54, %c128], %71 {strides = array<i32>} : memref<32x512xf32, #tpu.memory_space<vmem>>, vector<32x256xf32>,
    %c0_55 = arith.constant 0 : index
    %c111 = arith.constant 111 : index
    %76 = vector.load %arg11[%c0_55, %c111] : memref<32x512xf32, #tpu.memory_space<vmem>>, vector<32x256xf32>
    %77 = vector.broadcast %20 : vector<1x256xf32> to vector<32x256xf32>
    %78 = arith.mulf %76, %77 : vector<32x256xf32>
    %c0_56 = arith.constant 0 : index
    %c0_57 = arith.constant 0 : index
    %79 = vector.load %arg12[%c0_56, %c0_57] : memref<288x256xf32, #tpu.memory_space<vmem>>, vector<32x256xf32>
    tpu.vector_store %arg12[%c0_56, %c0_57], %78 {strides = array<i32>} : memref<288x256xf32, #tpu.memory_space<vmem>>, vector<32x256xf32>,
    %c0_58 = arith.constant 0 : index
    %c112 = arith.constant 112 : index
    %80 = vector.load %arg11[%c0_58, %c112] : memref<32x512xf32, #tpu.memory_space<vmem>>, vector<32x256xf32>
    %c32_59 = arith.constant 32 : index
    %c0_60 = arith.constant 0 : index
    %81 = vector.load %arg12[%c32_59, %c0_60] : memref<288x256xf32, #tpu.memory_space<vmem>>, vector<32x256xf32>
    tpu.vector_store %arg12[%c32_59, %c0_60], %80 {strides = array<i32>} : memref<288x256xf32, #tpu.memory_space<vmem>>, vector<32x256xf32>,
    %c0_61 = arith.constant 0 : index
    %c113 = arith.constant 113 : index
    %82 = vector.load %arg11[%c0_61, %c113] : memref<32x512xf32, #tpu.memory_space<vmem>>, vector<32x256xf32>
    %83 = vector.broadcast %24 : vector<1x256xf32> to vector<32x256xf32>
    %84 = arith.mulf %82, %83 : vector<32x256xf32>
    %c64_62 = arith.constant 64 : index
    %c0_63 = arith.constant 0 : index
    %85 = vector.load %arg12[%c64_62, %c0_63] : memref<288x256xf32, #tpu.memory_space<vmem>>, vector<32x256xf32>
    tpu.vector_store %arg12[%c64_62, %c0_63], %84 {strides = array<i32>} : memref<288x256xf32, #tpu.memory_space<vmem>>, vector<32x256xf32>,
    %c0_64 = arith.constant 0 : index
    %c127 = arith.constant 127 : index
    %86 = vector.load %arg11[%c0_64, %c127] : memref<32x512xf32, #tpu.memory_space<vmem>>, vector<32x256xf32>
    %87 = vector.broadcast %20 : vector<1x256xf32> to vector<32x256xf32>
    %88 = arith.mulf %86, %87 : vector<32x256xf32>
    %c96 = arith.constant 96 : index
    %c0_65 = arith.constant 0 : index
    %89 = vector.load %arg12[%c96, %c0_65] : memref<288x256xf32, #tpu.memory_space<vmem>>, vector<32x256xf32>
    tpu.vector_store %arg12[%c96, %c0_65], %88 {strides = array<i32>} : memref<288x256xf32, #tpu.memory_space<vmem>>, vector<32x256xf32>,
    %c0_66 = arith.constant 0 : index
    %c128_67 = arith.constant 128 : index
    %90 = vector.load %arg11[%c0_66, %c128_67] : memref<32x512xf32, #tpu.memory_space<vmem>>, vector<32x256xf32>
    %c128_68 = arith.constant 128 : index
    %c0_69 = arith.constant 0 : index
    %91 = vector.load %arg12[%c128_68, %c0_69] : memref<288x256xf32, #tpu.memory_space<vmem>>, vector<32x256xf32>
    tpu.vector_store %arg12[%c128_68, %c0_69], %90 {strides = array<i32>} : memref<288x256xf32, #tpu.memory_space<vmem>>, vector<32x256xf32>,
    %c0_70 = arith.constant 0 : index
    %c129 = arith.constant 129 : index
    %92 = vector.load %arg11[%c0_70, %c129] : memref<32x512xf32, #tpu.memory_space<vmem>>, vector<32x256xf32>
    %93 = vector.broadcast %24 : vector<1x256xf32> to vector<32x256xf32>
    %94 = arith.mulf %92, %93 : vector<32x256xf32>
    %c160 = arith.constant 160 : index
    %c0_71 = arith.constant 0 : index
    %95 = vector.load %arg12[%c160, %c0_71] : memref<288x256xf32, #tpu.memory_space<vmem>>, vector<32x256xf32>
    tpu.vector_store %arg12[%c160, %c0_71], %94 {strides = array<i32>} : memref<288x256xf32, #tpu.memory_space<vmem>>, vector<32x256xf32>,
    %c0_72 = arith.constant 0 : index
    %c143 = arith.constant 143 : index
    %96 = vector.load %arg11[%c0_72, %c143] : memref<32x512xf32, #tpu.memory_space<vmem>>, vector<32x256xf32>
    %97 = vector.broadcast %20 : vector<1x256xf32> to vector<32x256xf32>
    %98 = arith.mulf %96, %97 : vector<32x256xf32>
    %c192 = arith.constant 192 : index
    %c0_73 = arith.constant 0 : index
    %99 = vector.load %arg12[%c192, %c0_73] : memref<288x256xf32, #tpu.memory_space<vmem>>, vector<32x256xf32>
    tpu.vector_store %arg12[%c192, %c0_73], %98 {strides = array<i32>} : memref<288x256xf32, #tpu.memory_space<vmem>>, vector<32x256xf32>,
    %c0_74 = arith.constant 0 : index
    %c144 = arith.constant 144 : index
    %100 = vector.load %arg11[%c0_74, %c144] : memref<32x512xf32, #tpu.memory_space<vmem>>, vector<32x256xf32>
    %c224 = arith.constant 224 : index
    %c0_75 = arith.constant 0 : index
    %101 = vector.load %arg12[%c224, %c0_75] : memref<288x256xf32, #tpu.memory_space<vmem>>, vector<32x256xf32>
    tpu.vector_store %arg12[%c224, %c0_75], %100 {strides = array<i32>} : memref<288x256xf32, #tpu.memory_space<vmem>>, vector<32x256xf32>,
    %c0_76 = arith.constant 0 : index
    %c145 = arith.constant 145 : index
    %102 = vector.load %arg11[%c0_76, %c145] : memref<32x512xf32, #tpu.memory_space<vmem>>, vector<32x256xf32>
    %103 = vector.broadcast %24 : vector<1x256xf32> to vector<32x256xf32>
    %104 = arith.mulf %102, %103 : vector<32x256xf32>
    %c256 = arith.constant 256 : index
    %c0_77 = arith.constant 0 : index
    %105 = vector.load %arg12[%c256, %c0_77] : memref<288x256xf32, #tpu.memory_space<vmem>>, vector<32x256xf32>
    tpu.vector_store %arg12[%c256, %c0_77], %104 {strides = array<i32>} : memref<288x256xf32, #tpu.memory_space<vmem>>, vector<32x256xf32>,
    %c0_78 = arith.constant 0 : index
    %c0_79 = arith.constant 0 : index
    %106 = vector.load %arg8[%c0_78, %c0_79] : memref<32x288xf32, #tpu.memory_space<vmem>>, vector<32x288xf32>
    %c0_80 = arith.constant 0 : index
    %c0_81 = arith.constant 0 : index
    %107 = vector.load %arg12[%c0_80, %c0_81] : memref<288x256xf32, #tpu.memory_space<vmem>>, vector<288x256xf32>
    %cst_82 = arith.constant dense<0.000000e+00> : vector<32x256xf32>
    %108 = tpu.matmul %106, %107, %cst_82 {dimension_numbers = #tpu.dot_dimension_numbers<[1], [0], [0], [1], [0, 0, 1, 1], [], []>} : vector<32x288xf32>, vector<288x256xf32>, vector<32x256xf32> -> vector<32x256xf32>
    %c0_83 = arith.constant 0 : index
    %c0_84 = arith.constant 0 : index
    %109 = vector.load %arg9[%c0_83, %c0_84] : memref<32x1xf32, #tpu.memory_space<vmem>>, vector<32x1xf32>
    %110 = vector.broadcast %109 : vector<32x1xf32> to vector<32x256xf32>
    %111 = arith.addf %108, %110 : vector<32x256xf32>
    %112 = vector.extract_strided_slice %111 {offsets = [0, 0], sizes = [16, 256], strides = [1, 1]} : vector<32x256xf32> to vector<16x256xf32>
    %113 = vector.extract_strided_slice %111 {offsets = [16, 0], sizes = [16, 256], strides = [1, 1]} : vector<32x256xf32> to vector<16x256xf32>
    %c0_85 = arith.constant 0 : index
    %c0_86 = arith.constant 0 : index
    %c0_87 = arith.constant 0 : index
    %c0_88 = arith.constant 0 : index
    %114 = vector.load %arg2[%c0_85, %c0_86, %c0_87, %c0_88] : memref<1x1x16x256xf32, #tpu.memory_space<vmem>>, vector<1x1x16x256xf32>
    %115 = vector.shape_cast %114 : vector<1x1x16x256xf32> to vector<16x256xf32>
    %c0_89 = arith.constant 0 : index
    %c0_90 = arith.constant 0 : index
    %c0_91 = arith.constant 0 : index
    %116 = vector.load %arg4[%c0_89, %c0_90, %c0_91] : memref<1x16x1xf32, #tpu.memory_space<vmem>>, vector<1x16x1xf32>
    %117 = vector.shape_cast %116 : vector<1x16x1xf32> to vector<16x1xf32>
    %118 = vector.broadcast %117 : vector<16x1xf32> to vector<16x256xf32>
    %119 = arith.mulf %115, %118 : vector<16x256xf32>
    %c0_92 = arith.constant 0 : index
    %c0_93 = arith.constant 0 : index
    %c0_94 = arith.constant 0 : index
    %120 = vector.load %arg5[%c0_92, %c0_93, %c0_94] : memref<1x16x1xf32, #tpu.memory_space<vmem>>, vector<1x16x1xf32>
    %121 = vector.shape_cast %120 : vector<1x16x1xf32> to vector<16x1xf32>
    %122 = vector.broadcast %121 : vector<16x1xf32> to vector<16x256xf32>
    %123 = arith.addf %119, %122 : vector<16x256xf32>
    %124 = arith.mulf %123, %112 : vector<16x256xf32>
    %125 = arith.addf %124, %113 : vector<16x256xf32>
    %c0_95 = arith.constant 0 : index
    %c0_96 = arith.constant 0 : index
    %c0_97 = arith.constant 0 : index
    %c0_98 = arith.constant 0 : index
    %126 = vector.load %arg10[%c0_95, %c0_96, %c0_97, %c0_98] : memref<1x1x16x256xf32, #tpu.memory_space<vmem>>, vector<1x1x16x256xf32>
    %127 = vector.shape_cast %126 : vector<1x1x16x256xf32> to vector<16x256xf32>
    %128 = vector.shape_cast %125 : vector<16x256xf32> to vector<1x1x16x256xf32>
    tpu.vector_store %arg10[%c0_95, %c0_96, %c0_97, %c0_98], %128 {strides = array<i32>} : memref<1x1x16x256xf32, #tpu.memory_space<vmem>>, vector<1x1x16x256xf32>,
    return
  }
  func.func @transform_0(%arg0: i32, %arg1: i32) -> (i32, i32, i32, i32) {
    %c0_i32 = arith.constant 0 : i32
    %c0_i32_0 = arith.constant 0 : i32
    %c0_i32_1 = arith.constant 0 : i32
    return %arg0, %arg1, %c0_i32, %c0_i32_0 : i32, i32, i32, i32
  }
  func.func @transform_1(%arg0: i32, %arg1: i32) -> (i32, i32, i32, i32) {
    %c0_i32 = arith.constant 0 : i32
    %c0_i32_0 = arith.constant 0 : i32
    %c0_i32_1 = arith.constant 0 : i32
    return %arg0, %arg1, %c0_i32, %c0_i32_0 : i32, i32, i32, i32
  }
  func.func @transform_2(%arg0: i32, %arg1: i32) -> (i32, i32, i32) {
    %c0_i32 = arith.constant 0 : i32
    %c0_i32_0 = arith.constant 0 : i32
    %c0_i32_1 = arith.constant 0 : i32
    return %arg0, %c0_i32, %c0_i32_0 : i32, i32, i32
  }
  func.func @transform_3(%arg0: i32, %arg1: i32) -> (i32, i32, i32) {
    %c0_i32 = arith.constant 0 : i32
    %c0_i32_0 = arith.constant 0 : i32
    %c0_i32_1 = arith.constant 0 : i32
    return %arg0, %c0_i32, %c0_i32_0 : i32, i32, i32
  }
  func.func @transform_4(%arg0: i32, %arg1: i32) -> (i32, i32) {
    %c0_i32 = arith.constant 0 : i32
    %c0_i32_0 = arith.constant 0 : i32
    %c0_i32_1 = arith.constant 0 : i32
    return %c0_i32, %c0_i32_0 : i32, i32
  }
  func.func @transform_5(%arg0: i32, %arg1: i32) -> (i32, i32) {
    %c0_i32 = arith.constant 0 : i32
    %c0_i32_0 = arith.constant 0 : i32
    %c0_i32_1 = arith.constant 0 : i32
    return %c0_i32, %c0_i32_0 : i32, i32
  }
  func.func @transform_6(%arg0: i32, %arg1: i32) -> (i32, i32) {
    %c0_i32 = arith.constant 0 : i32
    %c0_i32_0 = arith.constant 0 : i32
    %c0_i32_1 = arith.constant 0 : i32
    return %c0_i32, %c0_i32_0 : i32, i32
  }
  func.func @transform_7(%arg0: i32, %arg1: i32) -> (i32, i32) {
    %c0_i32 = arith.constant 0 : i32
    %c0_i32_0 = arith.constant 0 : i32
    %c0_i32_1 = arith.constant 0 : i32
    return %c0_i32, %c0_i32_0 : i32, i32
  }
  func.func @transform_8(%arg0: i32, %arg1: i32) -> (i32, i32, i32, i32) {
    %c0_i32 = arith.constant 0 : i32
    %c0_i32_0 = arith.constant 0 : i32
    %c0_i32_1 = arith.constant 0 : i32
    return %arg0, %arg1, %c0_i32, %c0_i32_0 : i32, i32, i32, i32
  }
}

</mosaic_0001>

<bundles_post_ra>
// kernel: _lambda_.2
= control target key start
LH: loop header
LB: loop body
LE: loop exit
PB: predicated region body
PF: predicated region fallthrough
CT: control target
= control target key end

     0   :  { %s441_s9 = smov 0   ;;  %s443_s10 = smov 0   ;;  %s511_s0 = inlined_call_operand.vmem [shape: f32[2,4,16,256], index: 0, kind: input, shape index: {}]   ;;  %s512_s1 = inlined_call_operand.vmem [shape: f32[2,16,128], index: 1, kind: output, shape index: {0}]   ;;  %s513_s2 = inlined_call_operand.vmem [shape: f32[2,16,128], index: 2, kind: output, shape index: {1}]  }
   0x1   :  { %s445_s11 = smov 0   ;;  %s447_s12 = smov 0  }
   0x2   :  { %s449_s13 = smov 0  }
   0x3 LB: > { %s22_s14 = sadd.s32 1, %s415_s11  ;;  %s25_s15 = sadd.s32 1, %s419_s12  ;;  %s423_s13 = sphi %s449_s13, %s13_s13   ;;  %s419_s12 = sphi %s447_s12, %s517_s12   ;;  %s415_s11 = sphi %s445_s11, %s516_s11   ;;  %s411_s10 = sphi %s443_s10, %s515_s10   ;;  %s407_s9 = sphi %s441_s9, %s514_s9  }
   0x4   : > { %p23_p0 = scmp.ge.s32.totalorder %s22_s14, 4  ;;  %p331_p1 = scmp.ge.s32.totalorder %s423_s13, 1 }
   0x5   : > { %p133_p2 = scmp.lt.s32.totalorder %s423_s13, 9 }
   0x6   : > { %s519_s14 = smov (%p23_p0, %s22_s14), 0  ;;  %s521_s15 = smov (!%p23_p0, %s25_s15), %s419_s12 }
   0x7   : > { %p134_p3 = pnand %p331_p1, %p133_p2  ;;  %p27_p4 = scmp.ge.s32.totalorder %s521_s15, 2 }
   0x8   : > { %p164_p5 = scmp.lt.s32.totalorder (!%p134_p3), %s411_s10, 1  ;;  %p166_p6 = scmp.lt.s32.totalorder (!%p134_p3), %s407_s9, 3 }
   0x9   : > { %s523_s15 = smov (%p27_p4, %s521_s15), 0  ;;  %137 = sbr.rel (%p134_p3) target bundleno = 32 (0x20), region = 24 }
   0xa   : > { %p339_p7 = scmp.ne.s32.totalorder (!%p134_p3), %s407_s9, 0 }
  0x10   : > { %s525_s10 = smov (!%p164_p5, %s411_s10), 1  ;;  %186 = sbr.rel (%p339_p7) target bundleno = 23 (0x17), region = 28 }
  0x11   : > { %s167_s16 = scalar_select %p166_p6, %s407_s9, 3 }
  0x12   : > { %s333_s17 = sshll.u32 %s525_s10, 4  ;;  %v425_v0 = vmov (!%p339_p7), 0.0  }
  0x13   : > { %s332_s18 = sshll.u32 %s167_s16, 2  ;;  %s474_s21 = scalar_lea.vmem %s512_s1, %s333_s17 }
  0x14   : > { %s170_s22 = sadd.s32 %s333_s17, %s332_s18  ;;  %s479_s25 = scalar_lea.vmem %s513_s2, %s333_s17  ;;  %187 = vst [vmem:[%s474_s21] sm:$0xff] (!%p339_p7), %v425_v0  ;;  %188 = vst [vmem:[%s474_s21 + $0x8] sm:$0xff] (!%p339_p7), %v425_v0 }
  0x15   : > { %s334_s26 = sshll.u32 %s170_s22, 3  ;;  %189 = vst [vmem:[%s479_s25] sm:$0xff] (!%p339_p7), %v425_v0  ;;  %190 = vst [vmem:[%s479_s25 + $0x8] sm:$0xff] (!%p339_p7), %v425_v0 }
  0x16   : > { %s172_s29 = scalar_lea.vmem %s511_s0, %s334_s26 }
  0x17 PF: > { %v191_v1 = vld [vmem:[%s172_s29] sm:$0xff]  ;;  %v192_v2 = vld [vmem:[%s172_s29 + $0x8] sm:$0xff]  ;;  %v193_v5 = vld [vmem:[%s172_s29 + $0x10] sm:$0xff] }
  0x18   : > { %v201_v4 = vadd.f32 %v192_v2, %v191_v1  ;;  %v194_v6 = vld [vmem:[%s172_s29 + $0x18] sm:$0xff]  ;;  %v197_v8 = vmul.f32 %v191_v1, %v191_v1  ;;  %v203_v9 = vmul.f32 %v192_v2, %v192_v2  ;;  %v198_v12 = vmul.f32 %v193_v5, %v193_v5 }
  0x19   : > { %v202_v10 = vadd.f32 %v194_v6, %v193_v5  ;;  %v204_v13 = vmul.f32 %v194_v6, %v194_v6 }
  0x1a   : > { %v205_v15 = vadd.f32 %v203_v9, %v197_v8 }
  0x1b   : > { %v207_v3 = vld [vmem:[%s474_s21] sm:$0xff]  ;;  %v208_v7 = vld [vmem:[%s474_s21 + $0x8] sm:$0xff]  ;;  %v206_v18 = vadd.f32 %v204_v13, %v198_v12 }
  0x1c   : > { %v213_v11 = vld [vmem:[%s479_s25] sm:$0xff]  ;;  %v209_v14 = vadd.f32 %v207_v3, %v201_v4  ;;  %v214_v16 = vld [vmem:[%s479_s25 + $0x8] sm:$0xff]  ;;  %v210_v17 = vadd.f32 %v208_v7, %v202_v10 }
  0x1d   : > { %v215_v19 = vadd.f32 %v213_v11, %v205_v15  ;;  %v216_v20 = vadd.f32 %v214_v16, %v206_v18 }
  0x1e   : > { %211 = vst [vmem:[%s474_s21] sm:$0xff] %v209_v14  ;;  %212 = vst [vmem:[%s474_s21 + $0x8] sm:$0xff] %v210_v17 }
  0x1f   : > { %217 = vst [vmem:[%s479_s25] sm:$0xff] %v215_v19  ;;  %218 = vst [vmem:[%s479_s25 + $0x8] sm:$0xff] %v216_v20 }
  0x20 PF: > { %s13_s13 = sadd.s32 1, %s423_s13   ;;  %s514_s9 = smov %s415_s11 }
  0x21   : > { %p10_p8 = scmp.ge.s32.totalorder %s13_s13, 10   ;;  %s515_s10 = smov %s419_s12 }
  0x22   : > { %s516_s11 = smov %s519_s14  ;;  %s517_s12 = smov %s523_s15 }
  0x23   :  { %12 = sbr.rel (!%p10_p8) target bundleno = 3 (0x3), region = 70 }

// kernel: _lambda_.3
= control target key start
LH: loop header
LB: loop body
LE: loop exit
PB: predicated region body
PF: predicated region fallthrough
CT: control target
= control target key end

     0   :  { %s2684_s27 = smov 0   ;;  %s2686_s28 = smov 0   ;;  %s3377_s0 = inlined_call_operand.vmem [shape: f32[2,4,16,256], index: 0, kind: input, shape index: {}]   ;;  %s3378_s1 = inlined_call_operand.vmem [shape: f32[2,4,8,384], index: 1, kind: input, shape index: {}]   ;;  %s3379_s2 = inlined_call_operand.vmem [shape: f32[2,16,1], index: 2, kind: input, shape index: {}]   ;;  %s3380_s3 = inlined_call_operand.vmem [shape: f32[2,16,1], index: 3, kind: input, shape index: {}]   ;;  %s3381_s4 = inlined_call_operand.vmem [shape: f32[32,72], index: 4, kind: input, shape index: {}]   ;;  %s3382_s5 = inlined_call_operand.vmem [shape: f32[32,1], index: 5, kind: input, shape index: {}]   ;;  %s3383_s6 = inlined_call_operand.vmem [shape: f32[32,288], index: 6, kind: input, shape index: {}]   ;;  %s3384_s7 = inlined_call_operand.vmem [shape: f32[32,1], index: 7, kind: input, shape index: {}]   ;;  %s3385_s8 = inlined_call_operand.vmem [shape: f32[2,4,16,256], index: 8, kind: output, shape index: {}]  }
   0x1   :  { %s2688_s29 = smov 0   ;;  %s2690_s30 = smov 0  }
   0x2   :  { %s2692_s9 = smov 0  }
   0x3 LB: > { %s27_s10 = sadd.s32 1, %s2610_s29  ;;  %s30_s11 = sadd.s32 1, %s2614_s30  ;;  %s2618_s9 = sphi %s2692_s9, %s18_s9   ;;  %s2614_s30 = sphi %s2690_s30, %s3389_s30   ;;  %s2610_s29 = sphi %s2688_s29, %s3388_s29   ;;  %s2606_s28 = sphi %s2686_s28, %s3387_s28   ;;  %s2602_s27 = sphi %s2684_s27, %s3386_s27  }
   0x4   : > { %p28_p0 = scmp.ge.s32.totalorder %s27_s10, 4  ;;  %p2055_p1 = scmp.ge.s32.totalorder %s2618_s9, 1 }
   0x5   : > { %p318_p2 = scmp.lt.s32.totalorder %s2618_s9, 9 }
   0x6   : > { %s3391_s10 = smov (%p28_p0, %s27_s10), 0  ;;  %s3393_s11 = smov (!%p28_p0, %s30_s11), %s2614_s30 }
   0x7   : > { %p319_p3 = pnand %p2055_p1, %p318_p2  ;;  %p32_p4 = scmp.ge.s32.totalorder %s3393_s11, 2 }
   0x8   : > { %v416_v0 = vlaneseq (!%p319_p3)  ;;  %v2620_v1 = vmov (!%p319_p3), 0.0   ;;  %p379_p5 = scmp.lt.s32.totalorder (!%p319_p3), %s2606_s28, 1  ;;  %p381_p6 = scmp.lt.s32.totalorder (!%p319_p3), %s2602_s27, 3  ;;  %vm489_vm4 = vcmask (!%p319_p3), 15360   ;;  %vm522_vm5 = vcmask (!%p319_p3), 130048  }
   0x9   : > { %s3395_s11 = smov (%p32_p4, %s3393_s11), 0  ;;  %322 = sbr.rel (%p319_p3) target bundleno = 942 (0x3ae), region = 52 }
   0xa   : > { %800 = vmatprep.mubr.f32.mxu0 (!%p319_p3), %v2620_v1  ;;  %v417_v2 = vand.u32 (!%p319_p3), 127, %v416_v0  ;;  %s2621_s19 = smov (!%p319_p3), 2   ;;  %s2622_s20 = smov (!%p319_p3), 18   ;;  %vm603_vm6 = vcmask (!%p319_p3), 261120   ;;  %vm572_vm7 = vcmask (!%p319_p3), 146432   ;;  %vm473_vm8 = vcmask (!%p319_p3), 1039360  }
   0xb   : > { %s2623_s21 = smov (!%p319_p3), 16   ;;  %s2624_s22 = smov (!%p319_p3), 32   ;;  %vm653_vm9 = vcmask (!%p319_p3), 277504   ;;  %vm506_vm10 = vcmask (!%p319_p3), 1031168   ;;  %vm539_vm11 = vcmask (!%p319_p3), 916480   ;;  %vm558_vm12 = vcmask (!%p319_p3), 908288  }
   0xc   : > { %v418_v3 = vadd.s32 (!%p319_p3), 128, %v417_v2  ;;  %v423_v4 = vand.u32 (!%p319_p3), 15, %v417_v2  ;;  %s2625_s23 = smov (!%p319_p3), 34   ;;  %s2626_s24 = smov (!%p319_p3), 127   ;;  %v700_v2 = vld [vmem:[%s3382_s5 + $0x8] sm:$0xff] (!%p319_p3)  ;;  %vm589_vm13 = vcmask (!%p319_p3), 900096  }
   0xd   : > { %s2627_s25 = smov (!%p319_p3), 111   ;;  %s2628_s26 = smov (!%p319_p3), 126   ;;  %vm620_vm14 = vcmask (!%p319_p3), 785408   ;;  %vm639_vm15 = vcmask (!%p319_p3), 777216  }
   0xe   : > { %v430_v5 = vand.u32 (!%p319_p3), 15, %v418_v3  ;;  %vm449_vm0 = vcmp.lt.s32.totalorder (!%p319_p3), %v423_v4, 15  ;;  %vm443_vm1 = vcmp.gt.s32.totalorder (!%p319_p3), %v423_v4, 0  ;;  %s2633_s16 = smov (!%p319_p3), 95   ;;  %v699_v3 = vld [vmem:[%s3382_s5] sm:$0xff] (!%p319_p3)  ;;  %v2634_v4 = vmov (!%p319_p3), 0  }
   0xf   : > { %v2069_v6 = vsel (!%p319_p3), %vm449_vm0, 1.0, %v2620_v1  ;;  %v2724_v8 = vsel (!%p319_p3), %vm443_vm1, 1.0, %v2620_v1  ;;  %2309 = vset.pattern.permute.xlu1 (!%p319_p3), %v2634_v4  ;;  %2308 = vset.pattern.permute.xlu0 (!%p319_p3), %v2634_v4  ;;  %s2638_s17 = smov (!%p319_p3), 17   ;;  %vm670_vm0 = vcmask (!%p319_p3), 769024   ;;  %vm723_vm1 = vcmask (!%p319_p3), 588800  }
  0x10   : > { %s3397_s28 = smov (!%p379_p5, %s2606_s28), 1  ;;  %s3399_s27 = smov (!%p381_p6, %s2602_s27), 3  ;;  %vm450_vm2 = vcmp.lt.s32.totalorder %v430_v5, 15  ;;  %vm444_vm3 = vcmp.gt.s32.totalorder %v430_v5, 0  ;;  %v701_v5 = vld [vmem:[%s3382_s5 + $0x10] sm:$0xff] }
  0x11   : > { %s2188_s12 = smul.u32 12, %s3397_s28  ;;  %v2070_v7 = vsel %vm450_vm2, 1.0, %v2620_v1  ;;  %v2068_v9 = vsel %vm444_vm3, 1.0, %v2620_v1  ;;  %vm1030_vm2 = vcmask 924672   ;;  %vm1176_vm3 = vcmask 7168  }
  0x12   : > { %s2187_s13 = smul.u32 3, %s3399_s27  ;;  %v2727_v10 = vpack.i.bf16 %v2070_v7, %v2069_v6  ;;  %v2734_v11 = vpack.i.bf16 %v2068_v9, %v2724_v8  ;;  %v702_v6 = vld [vmem:[%s3382_s5 + $0x18] sm:$0xff] }
  0x14   : > { %s394_s14 = sadd.s32 %s2188_s12, %s2187_s13  ;;  %2249 = vrot.lane.b32.xlu0 %v2727_v10, %s2621_s19  ;;  %2259 = vrot.lane.b32.xlu1 %v2727_v10, %s2622_s20  ;;  %s2629_s12 = smov 112  }
  0x15   : > { %s2059_s15 = sshll.u32 %s394_s14, 3  ;;  %s2630_s13 = smov 110  }
  0x16   : > { %s396_s18 = scalar_lea.vmem %s3378_s1, %s2059_s15  ;;  %s2631_s14 = smov 96  }
  0x17   : > { %v2737_v12 = vld [vmem:[%s396_s18 + $0x8] sm:$0xff]  ;;  %v2739_v13 = vld [vmem:[%s396_s18 + $0x10] sm:$0xff]  ;;  %v2751_v15 = vld [vmem:[%s396_s18] sm:$0xff]  ;;  %s2632_s15 = smov 94  }
  0x18   : > { %2254 = vrot.lane.b32.xlu0 %v2734_v11, %s2623_s21  ;;  %2264 = vrot.lane.b32.xlu1 %v2734_v11, %s2624_s22  ;;  %v2746_v14 = vpack.i.bf16 %v2739_v13, %v2737_v12  ;;  %v458_v34 = vmul.f32 %v2068_v9, %v2737_v12  ;;  %v457_v47 = vmul.f32 %v2724_v8, %v2751_v15 }
  0x1c   : > { %2269 = vrot.lane.b32.xlu0 %v2727_v10, %s2625_s23  ;;  %2274 = vrot.lane.b32.xlu1 %v2746_v14, %s2626_s24 }
  0x20   : > { %2279 = vrot.lane.b32.xlu1 %v2746_v14, %s2627_s25  ;;  %467 = vrot.lane.b32.xlu0 %v2751_v15, %s2626_s24 }
  0x24   : > { %552 = vrot.lane.b32.xlu1 %v2751_v15, %s2627_s25 }
  0x86   : > { %v2250_v16 = vpop.permute.xlu0 %2249  ;;  %v2260_v17 = vpop.permute.xlu1 %2259 }
  0x87   : > { %v2252_v18 = vunpack.i.h.bf16 %v2250_v16  ;;  %v2251_v19 = vunpack.i.l.bf16 %v2250_v16  ;;  %v2261_v24 = vunpack.i.l.bf16 %v2260_v17  ;;  %v2262_v36 = vunpack.i.h.bf16 %v2260_v17 }
  0x89   : > { %v490_v20 = vsel %vm489_vm4, %v2251_v19, %v2252_v18  ;;  %v494_v21 = vmul.f32 %v2251_v19, %v2751_v15  ;;  %v496_v22 = vmul.f32 %v2252_v18, %v2739_v13  ;;  %v577_v37 = vmul.f32 %v2261_v24, %v2751_v15 }
  0x8a   : > { %v2255_v23 = vpop.permute.xlu0 %2254  ;;  %v495_v25 = vmul.f32 %v490_v20, %v2737_v12  ;;  %v2265_v26 = vpop.permute.xlu1 %2264  ;;  %v573_v51 = vsel %vm572_vm7, %v2261_v24, %v2262_v36  ;;  %v579_v58 = vmul.f32 %v2262_v36, %v2739_v13  ;;  %vm1083_vm4 = vcmask 121856  }
  0x8b   : > { %v2257_v27 = vunpack.i.h.bf16 %v2255_v23  ;;  %v2256_v28 = vunpack.i.l.bf16 %v2255_v23  ;;  %500 = vrot.lane.b32.xlu1 %v494_v21, %s2628_s26  ;;  %v2267_v29 = vunpack.i.h.bf16 %v2265_v26  ;;  %v2266_v30 = vunpack.i.l.bf16 %v2265_v26 }
  0x8c   : > { %v2283_v31 = vpack.i.bf16 %v496_v22, %v495_v25  ;;  %v578_v60 = vmul.f32 %v573_v51, %v2737_v12  ;;  %vm917_vm7 = vcmask 138240  }
  0x8d   : > { %v527_v32 = vmul.f32 %v2256_v28, %v2751_v15  ;;  %v604_v33 = vsel %vm603_vm6, %v2266_v30, %v2267_v29  ;;  %v523_v35 = vsel %vm522_vm5, %v2256_v28, %v2257_v27  ;;  %v608_v38 = vmul.f32 %v2266_v30, %v2751_v15 }
  0x8e   : > { %v2270_v39 = vpop.permute.xlu0 %2269  ;;  %v2275_v40 = vpop.permute.xlu1 %2274  ;;  %v610_v41 = vmul.f32 %v2267_v29, %v2739_v13  ;;  %v609_v42 = vmul.f32 %v604_v33, %v2737_v12  ;;  %v529_v48 = vmul.f32 %v2257_v27, %v2739_v13  ;;  %v528_v49 = vmul.f32 %v523_v35, %v2737_v12 }
  0x8f   : > { %2284 = vrot.lane.b32.xlu1 %v2283_v31, %s2628_s26  ;;  %533 = vrot.lane.b32.xlu0 %v527_v32, %s2629_s12  ;;  %v2277_v43 = vunpack.i.h.bf16 %v2275_v40  ;;  %v2276_v44 = vunpack.i.l.bf16 %v2275_v40  ;;  %v2272_v45 = vunpack.i.h.bf16 %v2270_v39  ;;  %v2271_v46 = vunpack.i.l.bf16 %v2270_v39 }
  0x90   : > { %v2303_v54 = vpack.i.bf16 %v610_v41, %v609_v42  ;;  %v2288_v59 = vpack.i.bf16 %v529_v48, %v528_v49  ;;  %v2293_v62 = vpack.i.bf16 %v579_v58, %v578_v60 }
  0x91   : > { %v475_v50 = vsel %vm473_vm8, %v2276_v44, %v2277_v43  ;;  %v654_v56 = vsel %vm653_vm9, %v2271_v46, %v2272_v45  ;;  %v658_v63 = vmul.f32 %v2271_v46, %v2751_v15  ;;  %v660_v0 = vmul.f32 %v2272_v45, %v2739_v13 }
  0x92   : > { %v468_v52 = vpop.permute.xlu0 %467  ;;  %v2083_v53 = vpack.c.bf16 %v475_v50, %v458_v34  ;;  %v659_v61 = vmul.f32 %v654_v56, %v2737_v12  ;;  %v2280_v7 = vpop.permute.xlu1 %2279  ;;  %v679_v56 = vld [vmem:[%s3381_s4 + $0x10] sm:$0xff] }
  0x93   : > { %583 = vrot.lane.b32.xlu0 %v577_v37, %s2630_s13  ;;  %614 = vrot.lane.b32.xlu1 %v608_v38, %s2631_s14  ;;  %v474_v55 = vsel %vm473_vm8, %v468_v52, %v2276_v44  ;;  %v2282_v21 = vunpack.i.h.bf16 %v2280_v7 }
  0x94   : > { %2084 = vmatprep.subr.bf16.mxu0 %v2083_v53  ;;  %v2085_v57 = vpack.c.bf16 %v474_v55, %v457_v47  ;;  %v677_v53 = vld [vmem:[%s3381_s4] sm:$0xff]  ;;  %v678_v55 = vld [vmem:[%s3381_s4 + $0x8] sm:$0xff] }
  0x96   : > { %2086 = vmatpush1.bf16.msra.mxu0 %v2085_v57  ;;  %v553_v8 = vpop.permute.xlu1 %552  ;;  %v680_v57 = vld [vmem:[%s3381_s4 + $0x18] sm:$0xff] }
  0x97   : > { %2289 = vrot.lane.b32.xlu0 %v2288_v59, %s2629_s12  ;;  %2304 = vrot.lane.b32.xlu1 %v2303_v54, %s2631_s14  ;;  %s2635_s14 = smov 113  }
  0x9b   : > { %2294 = vrot.lane.b32.xlu0 %v2293_v62, %s2630_s13  ;;  %666 = vrot.lane.b32.xlu1 %v659_v61, %s2632_s15 }
  0x9f   : > { %2299 = vrot.lane.b32.xlu0 %v2746_v14, %s2633_s16  ;;  %664 = vrot.lane.b32.xlu1 %v658_v63, %s2632_s15 }
  0xa3   : > { %633 = vrot.lane.b32.xlu0 %v2751_v15, %s2633_s16  ;;  %710 = vperm.xlu1 %2309, %v700_v2   ;;  %s2637_s16 = smov 15  }
  0xa7   : > { %668 = vrot.lane.b32.xlu0 %v660_v0, %s2632_s15  ;;  %715 = vperm.xlu1 %2309, %v701_v5   ;;  %s2636_s15 = smov 1  }
  0xab   : > { %705 = vperm.xlu0 %2308, %v699_v3   ;;  %2311 = vrot.lane.b32.xlu1 %v2734_v11, %s2627_s25 }
  0xaf   : > { %720 = vperm.xlu0 %2308, %v702_v6   ;;  %2321 = vrot.lane.b32.xlu1 %v2734_v11, %s2626_s24 }
  0xb3   : > { %2316 = vrot.lane.b32.xlu0 %v2727_v10, %s2635_s14  ;;  %2331 = vrot.lane.b32.xlu1 %v2734_v11, %s2637_s16  ;;  %v2281_v11 = vunpack.i.l.bf16 %v2280_v7 }
  0xb5   : > { %v560_v32 = vsel %vm558_vm12, %v2281_v11, %v2282_v21  ;;  %v559_v33 = vsel %vm558_vm12, %v553_v8, %v2281_v11 }
  0xb7   : > { %2326 = vrot.lane.b32.xlu0 %v2727_v10, %s2636_s15 }
  0xbb   : > { %2336 = vrot.lane.b32.xlu0 %v2727_v10, %s2638_s17 }
  0xfd   : > { %v501_v9 = vpop.permute.xlu1 %500 }
 0x101   : > { %v534_v12 = vpop.permute.xlu0 %533  ;;  %v2285_v13 = vpop.permute.xlu1 %2284 }
 0x102   : > { %v2287_v16 = vunpack.i.h.bf16 %v2285_v13  ;;  %v2286_v17 = vunpack.i.l.bf16 %v2285_v13 }
 0x104   : > { %v508_v22 = vsel %vm506_vm10, %v2286_v17, %v2287_v16  ;;  %v507_v23 = vsel %vm506_vm10, %v501_v9, %v2286_v17 }
 0x105   : > { %v584_v14 = vpop.permute.xlu0 %583  ;;  %v615_v15 = vpop.permute.xlu1 %614 }
 0x109   : > { %v2290_v18 = vpop.permute.xlu0 %2289  ;;  %v2305_v25 = vpop.permute.xlu1 %2304 }
 0x10a   : > { %v2292_v19 = vunpack.i.h.bf16 %v2290_v18  ;;  %v2291_v20 = vunpack.i.l.bf16 %v2290_v18  ;;  %v2307_v29 = vunpack.i.h.bf16 %v2305_v25  ;;  %v2306_v34 = vunpack.i.l.bf16 %v2305_v25 }
 0x10c   : > { %v541_v10 = vsel %vm539_vm11, %v2291_v20, %v2292_v19  ;;  %v540_v24 = vsel %vm539_vm11, %v534_v12, %v2291_v20  ;;  %v622_v42 = vsel %vm620_vm14, %v2306_v34, %v2307_v29  ;;  %v621_v47 = vsel %vm620_vm14, %v615_v15, %v2306_v34 }
 0x10d   : > { %v2295_v26 = vpop.permute.xlu0 %2294  ;;  %v2087_v27 = vpack.c.bf16 %v541_v10, %v508_v22  ;;  %v2089_v28 = vpack.c.bf16 %v540_v24, %v507_v23  ;;  %v667_v43 = vpop.permute.xlu1 %666 }
 0x10e   : > { %v2297_v30 = vunpack.i.h.bf16 %v2295_v26  ;;  %v2296_v31 = vunpack.i.l.bf16 %v2295_v26 }
 0x10f   : > { %2088 = vmatprep.subr.bf16.mxu0 %v2087_v27 }
 0x110   : > { %2090 = vmatpush1.bf16.msra.mxu0 %v2089_v28  ;;  %v591_v35 = vsel %vm589_vm13, %v2296_v31, %v2297_v30  ;;  %v590_v36 = vsel %vm589_vm13, %v584_v14, %v2296_v31 }
 0x111   : > { %v2300_v37 = vpop.permute.xlu0 %2299  ;;  %v2091_v38 = vpack.c.bf16 %v591_v35, %v560_v32  ;;  %v2093_v39 = vpack.c.bf16 %v590_v36, %v559_v33  ;;  %v665_v50 = vpop.permute.xlu1 %664 }
 0x112   : > { %v2302_v40 = vunpack.i.h.bf16 %v2300_v37  ;;  %v2301_v41 = vunpack.i.l.bf16 %v2300_v37  ;;  %v671_v54 = vsel %vm670_vm0, %v665_v50, %v667_v43 }
 0x113   : > { %2092 = vmatprep.subr.bf16.mxu0 %v2091_v38 }
 0x114   : > { %2094 = vmatpush1.bf16.msra.mxu0 %v2093_v39  ;;  %v641_v44 = vsel %vm639_vm15, %v2301_v41, %v2302_v40 }
 0x115   : > { %v634_v45 = vpop.permute.xlu0 %633  ;;  %v2095_v46 = vpack.c.bf16 %v641_v44, %v622_v42 }
 0x116   : > { %v640_v48 = vsel %vm639_vm15, %v634_v45, %v2301_v41 }
 0x117   : > { %v2097_v49 = vpack.c.bf16 %v640_v48, %v621_v47  ;;  %2096 = vmatprep.subr.bf16.mxu0 %v2095_v46 }
 0x119   : > { %v669_v51 = vpop.permute.xlu0 %668  ;;  %2098 = vmatpush1.bf16.msra.mxu0 %v2097_v49 }
 0x11a   : > { %v672_v52 = vsel %vm670_vm0, %v667_v43, %v669_v51 }
 0x11b   : > { %752 = vmatprep.subr.mxu0 %v672_v52 }
 0x11d   : > { %753 = vmatpush1.msra.mxu0 %v671_v54 }
 0x11e   : > { %2071 = vmatmul.mubr.msk.f32.vlgmr.msra.gmra.mrb[0].mxu0 %vm723_vm1, %v677_v53 }
 0x11f   : > { %806 = vmatprep.mubr.f32.mxu0 %v2620_v1 }
 0x122   : > { %2072 = vmatmul.mubr.msk.f32.gmra.mrb[2].mxu0 %vm723_vm1, %v678_v55  ;;  %v711_v58 = vpop.permute.xlu1 %710 }
 0x123   : > { %812 = vmatprep.mubr.f32.mxu0 %v2620_v1 }
 0x126   : > { %2073 = vmatmul.mubr.msk.f32.gmra.mrb[4].mxu0 %vm723_vm1, %v679_v56  ;;  %v716_v60 = vpop.permute.xlu1 %715 }
 0x127   : > { %818 = vmatprep.mubr.f32.mxu0 %v2620_v1 }
 0x12a   : > { %2074 = vmatmul.mubr.msk.f32.gmra.mrb[6].mxu0 %vm723_vm1, %v680_v57  ;;  %v706_v59 = vpop.permute.xlu0 %705  ;;  %v2312_v62 = vpop.permute.xlu1 %2311 }
 0x12b   : > { %1838 = vmatprep.mubr.f32.mxu0 %v2620_v1  ;;  %v2832_v0 = vunpack.i.h.bf16 %v2312_v62  ;;  %v2313_v2 = vunpack.i.l.bf16 %v2312_v62 }
 0x12d   : > { %v2838_v5 = vsel %vm558_vm12, %v2313_v2, %v2832_v0  ;;  %v869_v6 = vmul.f32 0.0, %v2313_v2 }
 0x12e   : > { %v2830_v61 = vpop.permute.xlu0 %720  ;;  %v2852_v13 = vpop.permute.xlu1 %2321 }
 0x12f   : > { %v2340_v8 = vpack.i.bf16 %v869_v6, %v869_v6  ;;  %v2855_v14 = vunpack.i.h.bf16 %v2852_v13  ;;  %v2323_v15 = vunpack.i.l.bf16 %v2852_v13 }
 0x131   : > { %2341 = vrot.lane.b32.xlu1 %v2340_v8, %s2638_s17  ;;  %2346 = vrot.lane.b32.xlu0 %v2340_v8, %s2638_s17  ;;  %v2862_v19 = vsel %vm473_vm8, %v2323_v15, %v2855_v14 }
 0x132   : > { %v2317_v63 = vpop.permute.xlu0 %2316 }
 0x133   : > { %v2834_v3 = vunpack.i.h.bf16 %v2317_v63  ;;  %v2318_v4 = vunpack.i.l.bf16 %v2317_v63  ;;  %v2932_v63 = vpop.permute.xlu1 %2331 }
 0x135   : > { %v2842_v7 = vsel %vm1030_vm2, %v2318_v4, %v2834_v3  ;;  %2351 = vrot.lane.b32.xlu1 %v2620_v1, %s2623_s21  ;;  %v1035_v9 = vmul.f32 0.0, %v2318_v4  ;;  %2356 = vrot.lane.b32.xlu0 %v2620_v1, %s2623_s21 }
 0x136   : > { %v2876_v27 = vpop.permute.xlu0 %2326 }
 0x137   : > { %v2360_v12 = vpack.i.bf16 %v1035_v9, %v1035_v9  ;;  %v2885_v32 = vunpack.i.l.bf16 %v2876_v27 }
 0x139   : > { %2361 = vrot.lane.b32.xlu1 %v2360_v12, %s2637_s16  ;;  %2366 = vrot.lane.b32.xlu0 %v2360_v12, %s2637_s16 }
 0x1f1   : > { %v802_v16 = vpop.f32.mrb[0].mxu0 }
 0x1f2   : > { %v803_v17 = vadd.f32 %v802_v16, %v706_v59  ;;  %v804_v18 = vpop.f32.mrb[1].mxu0 }
 0x1f3   : > { %v805_v20 = vadd.f32 %v804_v18, %v706_v59 }
 0x1f4   : > { %v2864_v21 = vmax.f32 %v803_v17, 0.0 }
 0x1f5   : > { %v2866_v11 = vmax.f32 %v805_v20, 0.0  ;;  %v808_v22 = vpop.f32.mrb[2].mxu0 }
 0x1f6   : > { %v809_v10 = vadd.f32 %v808_v22, %v711_v58  ;;  %v810_v23 = vpop.f32.mrb[3].mxu0  ;;  %v870_v24 = vmul.f32 %v2838_v5, %v2864_v21  ;;  %v1036_v25 = vmul.f32 %v2842_v7, %v2864_v21  ;;  %v2874_v26 = vmul.f32 %v2862_v19, %v2864_v21 }
 0x1f7   : > { %v811_v28 = vadd.f32 %v810_v23, %v711_v58  ;;  %v2370_v29 = vpack.i.bf16 %v2866_v11, %v2864_v21  ;;  %v871_v30 = vmul.f32 %v2832_v0, %v2866_v11  ;;  %v1037_v31 = vmul.f32 %v2834_v3, %v2866_v11 }
 0x1f8   : > { %v2887_v33 = vmax.f32 %v809_v10, 0.0  ;;  %v1130_v34 = vmul.f32 %v2855_v14, %v2866_v11  ;;  %v2913_v51 = vmul.f32 %v2885_v32, %v2864_v21  ;;  %v2333_v22 = vunpack.i.l.bf16 %v2932_v63 }
 0x1f9   : > { %v2891_v35 = vmax.f32 %v811_v28, 0.0  ;;  %v814_v36 = vpop.f32.mrb[4].mxu0  ;;  %2371 = vrot.lane.b32.xlu1 %v2370_v29, %s2623_s21  ;;  %v2375_v37 = vpack.i.bf16 %v871_v30, %v870_v24  ;;  %v2380_v38 = vpack.i.bf16 %v1037_v31, %v1036_v25  ;;  %v2975_v29 = vpop.permute.xlu0 %2336 }
 0x1fa   : > { %v815_v39 = vadd.f32 %v814_v36, %v716_v60  ;;  %v816_v40 = vpop.f32.mrb[5].mxu0  ;;  %v873_v41 = vmul.f32 %v2838_v5, %v2887_v33  ;;  %v1039_v42 = vmul.f32 %v2842_v7, %v2887_v33  ;;  %v2385_v43 = vpack.i.bf16 %v1130_v34, %v2874_v26 }
 0x1fb   : > { %v817_v44 = vadd.f32 %v816_v40, %v716_v60  ;;  %v2390_v45 = vpack.i.bf16 %v2891_v35, %v2887_v33  ;;  %v874_v46 = vmul.f32 %v2832_v0, %v2891_v35  ;;  %v1040_v47 = vmul.f32 %v2834_v3, %v2891_v35 }
 0x1fc   : > { %v2905_v48 = vmax.f32 %v815_v39, 0.0  ;;  %v1132_v49 = vmul.f32 %v2862_v19, %v2887_v33  ;;  %v1133_v50 = vmul.f32 %v2855_v14, %v2891_v35  ;;  %v2921_v56 = vmul.f32 %v2885_v32, %v2887_v33 }
 0x1fd   : > { %v2915_v52 = vmax.f32 %v817_v44, 0.0  ;;  %v820_v53 = vpop.f32.mrb[6].mxu0  ;;  %2391 = vrot.lane.b32.xlu0 %v2390_v45, %s2623_s21  ;;  %2376 = vrot.lane.b32.xlu1 %v2375_v37, %s2638_s17  ;;  %v2395_v54 = vpack.i.bf16 %v874_v46, %v873_v41  ;;  %v2400_v55 = vpack.i.bf16 %v1040_v47, %v1039_v42  ;;  %v1329_v36 = vmul.f32 %v2333_v22, %v2864_v21 }
 0x1fe   : > { %v821_v57 = vadd.f32 %v820_v53, %v2830_v61  ;;  %v822_v58 = vpop.f32.mrb[7].mxu0  ;;  %v2405_v59 = vpack.i.bf16 %v1133_v50, %v1132_v49  ;;  %v2926_v60 = vmul.f32 %v2838_v5, %v2905_v48  ;;  %v2930_v62 = vmul.f32 %v2842_v7, %v2905_v48 }
 0x1ff   : > { %v823_v2 = vadd.f32 %v822_v58, %v2830_v61  ;;  %v2410_v4 = vpack.i.bf16 %v2915_v52, %v2905_v48  ;;  %v877_v6 = vmul.f32 %v2832_v0, %v2915_v52  ;;  %v2941_v8 = vmul.f32 %v2834_v3, %v2915_v52 }
 0x200   : > { %v2943_v9 = vmax.f32 %v821_v57, 0.0  ;;  %v2947_v12 = vmul.f32 %v2862_v19, %v2905_v48  ;;  %v2951_v16 = vmul.f32 %v2855_v14, %v2915_v52  ;;  %v2460_v61 = vpack.i.bf16 %v2921_v56, %v2913_v51 }
 0x201   : > { %v2955_v17 = vmax.f32 %v823_v2, 0.0  ;;  %2396 = vrot.lane.b32.xlu0 %v2395_v54, %s2638_s17  ;;  %2381 = vrot.lane.b32.xlu1 %v2380_v38, %s2637_s16  ;;  %v2415_v18 = vpack.i.bf16 %v877_v6, %v2926_v60  ;;  %v2420_v20 = vpack.i.bf16 %v2941_v8, %v2930_v62  ;;  %v2991_v37 = vunpack.i.l.bf16 %v2975_v29 }
 0x202   : > { %v879_v10 = vmul.f32 %v2838_v5, %v2943_v9  ;;  %v2440_v23 = vpack.i.bf16 %v2951_v16, %v2947_v12  ;;  %v1045_v24 = vmul.f32 %v2842_v7, %v2943_v9  ;;  %v1138_v5 = vmul.f32 %v2862_v19, %v2943_v9 }
 0x203   : > { %v2425_v25 = vpack.i.bf16 %v2955_v17, %v2943_v9  ;;  %v880_v26 = vmul.f32 %v2832_v0, %v2955_v17  ;;  %v1046_v28 = vmul.f32 %v2834_v3, %v2955_v17  ;;  %v1139_v30 = vmul.f32 %v2855_v14, %v2955_v17 }
 0x204   : > { %v1243_v7 = vmul.f32 %v2885_v32, %v2905_v48  ;;  %v1246_v3 = vmul.f32 %v2885_v32, %v2943_v9  ;;  %v1332_v19 = vmul.f32 %v2333_v22, %v2887_v33  ;;  %v2329_v14 = vunpack.i.h.bf16 %v2876_v27 }
 0x205   : > { %2401 = vrot.lane.b32.xlu0 %v2400_v55, %s2637_s16  ;;  %2386 = vrot.lane.b32.xlu1 %v2385_v43, %s2636_s15  ;;  %v2430_v31 = vpack.i.bf16 %v880_v26, %v879_v10  ;;  %v2475_v0 = vpack.i.bf16 %v1046_v28, %v1045_v24  ;;  %v2490_v34 = vpack.i.bf16 %v1139_v30, %v1138_v5  ;;  %v1128_v27 = vmul.f32 0.0, %v2323_v15 }
 0x206   : > { %v2470_v38 = vpack.i.bf16 %v1246_v3, %v1243_v7  ;;  %v2495_v39 = vpack.i.bf16 %v1332_v19, %v1329_v36  ;;  %v2520_v40 = vpack.i.bf16 %v2887_v33, %v2864_v21  ;;  %v2996_v41 = vmul.f32 %v2333_v22, %v2905_v48 }
 0x207   : > { %v2999_v42 = vmul.f32 %v2333_v22, %v2943_v9  ;;  %v1233_v44 = vsel %vm1176_vm3, %v2885_v32, %v2329_v14  ;;  %v3011_v45 = vmul.f32 %v2991_v37, %v2864_v21  ;;  %v3015_v46 = vmul.f32 %v2991_v37, %v2887_v33 }
 0x208   : > { %v1239_v47 = vmul.f32 0.0, %v2329_v14  ;;  %v2560_v15 = vpack.i.bf16 %v2943_v9, %v2905_v48  ;;  %v2435_v32 = vpack.i.bf16 %v1128_v27, %v1128_v27  ;;  %v1238_v49 = vmul.f32 %v1233_v44, %v2866_v11  ;;  %v1566_v14 = vld [vmem:[%s3383_s6 + $0x8] sm:$0xff]  ;;  %v1651_v27 = vld [vmem:[%s3384_s7 + $0x10] sm:$0xff] }
 0x209   : > { %2406 = vrot.lane.b32.xlu0 %v2405_v59, %s2636_s15  ;;  %2426 = vrot.lane.b32.xlu1 %v2425_v25, %s2623_s21  ;;  %v2505_v43 = vpack.i.bf16 %v2999_v42, %v2996_v41  ;;  %v2540_v13 = vpack.i.bf16 %v3015_v46, %v3011_v45  ;;  %v3026_v50 = vmul.f32 %v2991_v37, %v2905_v48  ;;  %v2334_v62 = vunpack.i.h.bf16 %v2932_v63  ;;  %v2342_v45 = vpop.permute.xlu1 %2341 }
 0x20a   : > { %v3030_v53 = vmul.f32 %v2991_v37, %v2943_v9  ;;  %v2131_v54 = vpack.c.bf16 %v2891_v35, %v2866_v11  ;;  %v2133_v55 = vpack.c.bf16 %v2887_v33, %v2864_v21  ;;  %v2135_v57 = vpack.c.bf16 %v2955_v17, %v2915_v52  ;;  %1749 = vmatprep.mubr.f32.mxu1 %v1566_v14 }
 0x20b   : > { %v2137_v58 = vpack.c.bf16 %v2943_v9, %v2905_v48  ;;  %v2450_v60 = vpack.i.bf16 %v1239_v47, %v1238_v49  ;;  %v1325_v2 = vsel %vm1083_vm4, %v2333_v22, %v2334_v62  ;;  %v1241_v6 = vmul.f32 %v1233_v44, %v2891_v35 }
 0x20c   : > { %v2575_v59 = vpack.i.bf16 %v3030_v53, %v3026_v50  ;;  %v1330_v8 = vmul.f32 %v1325_v2, %v2866_v11  ;;  %v1244_v16 = vmul.f32 %v1233_v44, %v2915_v52  ;;  %v1333_v51 = vmul.f32 %v1325_v2, %v2891_v35 }
 0x20d   : > { %2411 = vrot.lane.b32.xlu0 %v2410_v4, %s2623_s21  ;;  %2431 = vrot.lane.b32.xlu1 %v2430_v31, %s2638_s17  ;;  %v1331_v4 = vmul.f32 0.0, %v2334_v62  ;;  %v2455_v63 = vpack.i.bf16 %v1239_v47, %v1241_v6  ;;  %v2339_v22 = vunpack.i.h.bf16 %v2975_v29  ;;  %v2515_v29 = vpack.i.bf16 %v2620_v1, %v2891_v35 }
 0x20e   : > { %v1339_v7 = vmul.f32 %v1325_v2, %v2955_v17  ;;  %v2550_v3 = vpack.i.bf16 %v2620_v1, %v2915_v52  ;;  %v2344_v6 = vunpack.i.h.bf16 %v2342_v45 }
 0x20f   : > { %v2480_v12 = vpack.i.bf16 %v1331_v4, %v1330_v8  ;;  %v2485_v56 = vpack.i.bf16 %v1331_v4, %v1333_v51  ;;  %v1489_v24 = vsel %vm917_vm7, %v2991_v37, %v2339_v22  ;;  %v1495_v28 = vmul.f32 0.0, %v2339_v22 }
 0x210   : > { %v1497_v26 = vmul.f32 %v1489_v24, %v2891_v35  ;;  %v1494_v30 = vmul.f32 %v1489_v24, %v2866_v11  ;;  %v1500_v36 = vmul.f32 %v1489_v24, %v2915_v52  ;;  %v1503_v19 = vmul.f32 %v1489_v24, %v2955_v17 }
 0x211   : > { %2416 = vrot.lane.b32.xlu0 %v2415_v18, %s2638_s17  ;;  %2436 = vrot.lane.b32.xlu1 %v2435_v32, %s2636_s15  ;;  %v2465_v18 = vpack.i.bf16 %v1239_v47, %v1244_v16  ;;  %v2343_v8 = vunpack.i.l.bf16 %v2342_v45 }
 0x212   : > { %v2535_v5 = vpack.i.bf16 %v1495_v28, %v1497_v26  ;;  %v2525_v31 = vpack.i.bf16 %v1495_v28, %v1494_v30  ;;  %v2565_v37 = vpack.i.bf16 %v1495_v28, %v1500_v36 }
 0x215   : > { %2421 = vrot.lane.b32.xlu0 %v2420_v20, %s2637_s16  ;;  %2451 = vrot.lane.b32.xlu1 %v2450_v60, %s2626_s24  ;;  %v1336_v20 = vmul.f32 %v1325_v2, %v2915_v52 }
 0x217   : > { %v2500_v10 = vpack.i.bf16 %v1331_v4, %v1336_v20 }
 0x219   : > { %2441 = vrot.lane.b32.xlu0 %v2440_v23, %s2636_s15  ;;  %2461 = vrot.lane.b32.xlu1 %v2460_v61, %s2626_s24  ;;  %v2510_v61 = vpack.i.bf16 %v2620_v1, %v2866_v11  ;;  %v1247_v23 = vmul.f32 %v1233_v44, %v2955_v17 }
 0x21b   : > { %v2530_v25 = vpack.i.bf16 %v1239_v47, %v1247_v23  ;;  %v2347_v47 = vpop.permute.xlu0 %2346 }
 0x21d   : > { %2446 = vrot.lane.b32.xlu0 %v2435_v32, %s2636_s15  ;;  %2476 = vrot.lane.b32.xlu1 %v2475_v0, %s2637_s16  ;;  %v2545_v0 = vpack.i.bf16 %v1331_v4, %v1339_v7  ;;  %v2349_v7 = vunpack.i.h.bf16 %v2347_v47 }
 0x221   : > { %2456 = vrot.lane.b32.xlu0 %v2455_v63, %s2626_s24  ;;  %2481 = vrot.lane.b32.xlu1 %v2480_v12, %s2635_s14 }
 0x225   : > { %2466 = vrot.lane.b32.xlu0 %v2465_v18, %s2626_s24  ;;  %2491 = vrot.lane.b32.xlu1 %v2490_v34, %s2636_s15  ;;  %v2555_v34 = vpack.i.bf16 %v2620_v1, %v2955_v17 }
 0x229   : > { %2471 = vrot.lane.b32.xlu0 %v2470_v38, %s2626_s24  ;;  %2496 = vrot.lane.b32.xlu1 %v2495_v39, %s2635_s14  ;;  %v2570_v38 = vpack.i.bf16 %v1495_v28, %v1503_v19  ;;  %v1649_v39 = vld [vmem:[%s3384_s7] sm:$0xff] }
 0x22d   : > { %2486 = vrot.lane.b32.xlu0 %v2485_v56, %s2635_s14  ;;  %2511 = vrot.lane.b32.xlu1 %v2510_v61, %s2629_s12 }
 0x231   : > { %2501 = vrot.lane.b32.xlu0 %v2500_v10, %s2635_s14  ;;  %2521 = vrot.lane.b32.xlu1 %v2520_v40, %s2629_s12  ;;  %v1650_v40 = vld [vmem:[%s3384_s7 + $0x8] sm:$0xff] }
 0x235   : > { %2506 = vrot.lane.b32.xlu0 %v2505_v43, %s2635_s14  ;;  %2531 = vrot.lane.b32.xlu1 %v2530_v25, %s2626_s24  ;;  %v1652_v43 = vld [vmem:[%s3384_s7 + $0x18] sm:$0xff] }
 0x239   : > { %2516 = vrot.lane.b32.xlu0 %v2515_v29, %s2629_s12  ;;  %2536 = vrot.lane.b32.xlu1 %v2535_v5, %s2627_s25 }
 0x23d   : > { %2526 = vrot.lane.b32.xlu0 %v2525_v31, %s2627_s25  ;;  %2546 = vrot.lane.b32.xlu1 %v2545_v0, %s2635_s14  ;;  %s3107_s14 = sshll.u32 %s3397_s28, 4  ;;  %v2348_v31 = vunpack.i.l.bf16 %v2347_v47 }
 0x23e   : > { %s401_s20 = scalar_lea.vmem %s3379_s2, %s3107_s14  ;;  %s406_s18 = scalar_lea.vmem %s3380_s3, %s3107_s14 }
 0x23f   : > { %v1867_v41 = vld [vmem:[%s401_s20] sm:$0xff]  ;;  %v1868_v42 = vld [vmem:[%s401_s20 + $0x8] sm:$0xff] }
 0x240   : > { %v1883_v44 = vld [vmem:[%s406_s18] sm:$0xff]  ;;  %v1884_v46 = vld [vmem:[%s406_s18 + $0x8] sm:$0xff] }
 0x241   : > { %2541 = vrot.lane.b32.xlu0 %v2540_v13, %s2627_s25  ;;  %2551 = vrot.lane.b32.xlu1 %v2550_v3, %s2629_s12  ;;  %v3135_v13 = vpop.permute.xlu1 %2351 }
 0x245   : > { %2556 = vrot.lane.b32.xlu0 %v2555_v34, %s2629_s12  ;;  %2561 = vrot.lane.b32.xlu1 %v2560_v15, %s2629_s12  ;;  %v3137_v15 = vpop.permute.xlu0 %2356  ;;  %v3139_v32 = vpop.permute.xlu1 %2361  ;;  %s2056_s12 = sshll.u32 %s3399_s27, 2 }
 0x246   : > { %s3349_s22 = sadd.s32 %s3107_s14, %s2056_s12 }
 0x247   : > { %s2058_s23 = sshll.u32 %s3349_s22, 3 }
 0x248   : > { %s387_s18 = scalar_lea.vmem %s3377_s0, %s2058_s23 }
 0x249   : > { %2566 = vrot.lane.b32.xlu0 %v2565_v37, %s2627_s25  ;;  %2571 = vrot.lane.b32.xlu1 %v2570_v38, %s2627_s25  ;;  %v3141_v49 = vpop.permute.xlu0 %2366 }
 0x24d   : > { %2576 = vrot.lane.b32.xlu0 %v2575_v59, %s2627_s25  ;;  %1655 = vperm.xlu1 %2309, %v1649_v39   ;;  %s415_s25 = scalar_lea.vmem %s3385_s8, %s2058_s23 }
 0x251   : > { %1660 = vperm.xlu0 %2308, %v1650_v40   ;;  %1871 = vperm.xlu1 %2309, %v1867_v41  }
 0x255   : > { %1876 = vperm.xlu0 %2308, %v1868_v42   ;;  %1665 = vperm.xlu1 %2309, %v1651_v27  }
 0x259   : > { %1670 = vperm.xlu0 %2308, %v1652_v43   ;;  %1887 = vperm.xlu1 %2309, %v1883_v44   ;;  %v2354_v43 = vunpack.i.h.bf16 %v3135_v13 }
 0x25d   : > { %1892 = vperm.xlu0 %2308, %v1884_v46  }
 0x26b   : > { %v3143_v50 = vpop.permute.xlu1 %2371 }
 0x26c   : > { %v2374_v34 = vunpack.i.h.bf16 %v3143_v50  ;;  %v2373_v36 = vunpack.i.l.bf16 %v3143_v50 }
 0x26f   : > { %v2392_v53 = vpop.permute.xlu0 %2391  ;;  %v2377_v59 = vpop.permute.xlu1 %2376 }
 0x270   : > { %v2379_v60 = vunpack.i.h.bf16 %v2377_v59  ;;  %v2378_v62 = vunpack.i.l.bf16 %v2377_v59  ;;  %v2394_v28 = vunpack.i.h.bf16 %v2392_v53  ;;  %v2393_v29 = vunpack.i.l.bf16 %v2392_v53 }
 0x271   : > { %v991_v59 = vsel %vm522_vm5, %v2373_v36, %v2374_v34 }
 0x272   : > { %v919_v16 = vsel %vm917_vm7, %v2378_v62, %v2379_v60  ;;  %v918_v51 = vsel %vm917_vm7, %v2343_v8, %v2378_v62  ;;  %v993_v39 = vsel %vm522_vm5, %v2393_v29, %v2394_v28  ;;  %v2353_v60 = vunpack.i.l.bf16 %v3135_v13 }
 0x273   : > { %v2397_v2 = vpop.permute.xlu0 %2396  ;;  %v3145_v4 = vpop.permute.xlu1 %2381  ;;  %v2107_v62 = vpack.c.bf16 %v993_v39, %v991_v59  ;;  %v2364_v28 = vunpack.i.h.bf16 %v3139_v32 }
 0x274   : > { %v2399_v63 = vunpack.i.h.bf16 %v2397_v2  ;;  %v2398_v12 = vunpack.i.l.bf16 %v2397_v2  ;;  %v992_v2 = vsel %vm522_vm5, %v2354_v43, %v2393_v29 }
 0x276   : > { %v921_v18 = vsel %vm917_vm7, %v2398_v12, %v2399_v63  ;;  %v920_v56 = vsel %vm917_vm7, %v2344_v6, %v2398_v12  ;;  %v2358_v6 = vunpack.i.l.bf16 %v3137_v15 }
 0x277   : > { %v3151_v61 = vpop.permute.xlu0 %2401  ;;  %v3153_v20 = vpop.permute.xlu1 %2386  ;;  %v2099_v22 = vpack.c.bf16 %v921_v18, %v919_v16  ;;  %v2101_v10 = vpack.c.bf16 %v920_v56, %v918_v51  ;;  %v2384_v16 = vunpack.i.h.bf16 %v3145_v4  ;;  %v2383_v18 = vunpack.i.l.bf16 %v3145_v4 }
 0x278   : > { %v2404_v8 = vunpack.i.h.bf16 %v3151_v61  ;;  %v2403_v63 = vunpack.i.l.bf16 %v3151_v61  ;;  %v990_v56 = vsel %vm522_vm5, %v2353_v60, %v2373_v36  ;;  %v2363_v36 = vunpack.i.l.bf16 %v3139_v32 }
 0x279   : > { %2100 = vmatprep.subr.bf16.mxu1 %v2099_v22  ;;  %v2359_v22 = vunpack.i.h.bf16 %v3137_v15 }
 0x27a   : > { %2102 = vmatpush1.bf16.msra.mxu1 %v2101_v10  ;;  %v2109_v10 = vpack.c.bf16 %v992_v2, %v990_v56  ;;  %v1087_v4 = vsel %vm1083_vm4, %v2403_v63, %v2404_v8  ;;  %v1084_v32 = vsel %vm1083_vm4, %v2363_v36, %v2383_v18 }
 0x27b   : > { %v3155_v23 = vpop.permute.xlu0 %2406  ;;  %v2427_v24 = vpop.permute.xlu1 %2426 }
 0x27c   : > { %v2429_v50 = vunpack.i.h.bf16 %v2427_v24  ;;  %v2428_v53 = vunpack.i.l.bf16 %v2427_v24 }
 0x27e   : > { %v997_v24 = vsel %vm522_vm5, %v2428_v53, %v2429_v50 }
 0x27f   : > { %v2412_v25 = vpop.permute.xlu0 %2411  ;;  %v2432_v26 = vpop.permute.xlu1 %2431 }
 0x280   : > { %v2434_v5 = vunpack.i.h.bf16 %v2432_v26  ;;  %v2433_v30 = vunpack.i.l.bf16 %v2432_v26  ;;  %v2414_v37 = vunpack.i.h.bf16 %v2412_v25  ;;  %v2413_v38 = vunpack.i.l.bf16 %v2412_v25 }
 0x281   : > { %v996_v26 = vsel %vm522_vm5, %v2359_v22, %v2428_v53 }
 0x282   : > { %v925_v41 = vsel %vm917_vm7, %v2433_v30, %v2434_v5  ;;  %v924_v27 = vsel %vm917_vm7, %v2349_v7, %v2433_v30  ;;  %v995_v12 = vsel %vm522_vm5, %v2413_v38, %v2414_v37  ;;  %v994_v61 = vsel %vm522_vm5, %v2358_v6, %v2413_v38 }
 0x283   : > { %v2417_v0 = vpop.permute.xlu0 %2416  ;;  %v3157_v3 = vpop.permute.xlu1 %2436  ;;  %v2111_v25 = vpack.c.bf16 %v997_v24, %v995_v12  ;;  %v2113_v30 = vpack.c.bf16 %v996_v26, %v994_v61  ;;  %v1085_v7 = vsel %vm1083_vm4, %v2383_v18, %v2384_v16  ;;  %v2409_v37 = vunpack.i.h.bf16 %v3155_v23 }
 0x284   : > { %v2419_v19 = vunpack.i.h.bf16 %v2417_v0  ;;  %v2418_v14 = vunpack.i.l.bf16 %v2417_v0  ;;  %v2408_v38 = vunpack.i.l.bf16 %v3155_v23  ;;  %v2438_v50 = vunpack.i.l.bf16 %v3157_v3 }
 0x286   : > { %v923_v40 = vsel %vm917_vm7, %v2418_v14, %v2419_v19  ;;  %v922_v42 = vsel %vm917_vm7, %v2348_v31, %v2418_v14  ;;  %v2115_v19 = vpack.c.bf16 %v1087_v4, %v1085_v7  ;;  %v1086_v14 = vsel %vm1083_vm4, %v2364_v28, %v2403_v63 }
 0x287   : > { %v3167_v44 = vpop.permute.xlu0 %2421  ;;  %v3169_v45 = vpop.permute.xlu1 %2451  ;;  %v2103_v46 = vpack.c.bf16 %v925_v41, %v923_v40  ;;  %v2105_v47 = vpack.c.bf16 %v924_v27, %v922_v42  ;;  %v2369_v40 = vunpack.i.h.bf16 %v3141_v49  ;;  %v2389_v41 = vunpack.i.h.bf16 %v3153_v20 }
 0x288   : > { %v2424_v15 = vunpack.i.h.bf16 %v3167_v44  ;;  %v2423_v31 = vunpack.i.l.bf16 %v3167_v44  ;;  %v2388_v42 = vunpack.i.l.bf16 %v3153_v20  ;;  %v2368_v44 = vunpack.i.l.bf16 %v3141_v49 }
 0x289   : > { %2104 = vmatprep.subr.bf16.mxu1 %v2103_v46  ;;  %v2117_v46 = vpack.c.bf16 %v1086_v14, %v1084_v32  ;;  %v1180_v20 = vsel %vm1176_vm3, %v2408_v38, %v2409_v37 }
 0x28a   : > { %2106 = vmatpush1.bf16.msra.mxu1 %v2105_v47  ;;  %v1089_v23 = vsel %vm1083_vm4, %v2423_v31, %v2424_v15  ;;  %v2439_v47 = vunpack.i.h.bf16 %v3157_v3  ;;  %v1088_v49 = vsel %vm1083_vm4, %v2368_v44, %v2423_v31  ;;  %v1178_v6 = vsel %vm1176_vm3, %v2388_v42, %v2389_v41 }
 0x28b   : > { %v3180_v51 = vpop.permute.xlu0 %2441  ;;  %v3182_v13 = vpop.permute.xlu1 %2461  ;;  %2108 = vmatprep.subr.bf16.mxu1 %v2107_v62  ;;  %v2123_v16 = vpack.c.bf16 %v1180_v20, %v1178_v6  ;;  %v1177_v18 = vsel %vm1176_vm3, %v2438_v50, %v2388_v42 }
 0x28c   : > { %v2444_v60 = vunpack.i.h.bf16 %v3180_v51  ;;  %v2443_v8 = vunpack.i.l.bf16 %v3180_v51  ;;  %v1179_v56 = vsel %vm1176_vm3, %v2439_v47, %v2408_v38  ;;  %v2464_v37 = vunpack.i.h.bf16 %v3182_v13 }
 0x28d   : > { %v2125_v26 = vpack.c.bf16 %v1179_v56, %v1177_v18  ;;  %v2463_v38 = vunpack.i.l.bf16 %v3182_v13 }
 0x28e   : > { %2110 = vmatpush1.bf16.msra.mxu1 %v2109_v10  ;;  %v1182_v51 = vsel %vm1176_vm3, %v2443_v8, %v2444_v60 }
 0x28f   : > { %v2447_v29 = vpop.permute.xlu0 %2446  ;;  %v2477_v5 = vpop.permute.xlu1 %2476  ;;  %2112 = vmatprep.subr.bf16.mxu1 %v2111_v25 }
 0x290   : > { %v2479_v0 = vunpack.i.h.bf16 %v2477_v5  ;;  %v2478_v34 = vunpack.i.l.bf16 %v2477_v5  ;;  %v2449_v10 = vunpack.i.h.bf16 %v2447_v29  ;;  %v2448_v24 = vunpack.i.l.bf16 %v2447_v29 }
 0x292   : > { %2114 = vmatpush1.bf16.msra.mxu1 %v2113_v30  ;;  %v1091_v39 = vsel %vm1083_vm4, %v2478_v34, %v2479_v0  ;;  %v1090_v59 = vsel %vm1083_vm4, %v2369_v40, %v2478_v34  ;;  %v1181_v7 = vsel %vm1176_vm3, %v2448_v24, %v2443_v8  ;;  %v2454_v0 = vunpack.i.h.bf16 %v3169_v45 }
 0x293   : > { %v3202_v27 = vpop.permute.xlu0 %2456  ;;  %v3204_v43 = vpop.permute.xlu1 %2481  ;;  %2116 = vmatprep.subr.bf16.mxu1 %v2115_v19  ;;  %v2119_v53 = vpack.c.bf16 %v1091_v39, %v1089_v23  ;;  %v2121_v12 = vpack.c.bf16 %v1090_v59, %v1088_v49  ;;  %v2453_v34 = vunpack.i.l.bf16 %v3169_v45 }
 0x294   : > { %v2459_v29 = vunpack.i.h.bf16 %v3202_v27  ;;  %v2458_v31 = vunpack.i.l.bf16 %v3202_v27  ;;  %v2484_v45 = vunpack.i.h.bf16 %v3204_v43 }
 0x295   : > { %v1286_v11 = vsel %vm473_vm8, %v2453_v34, %v2454_v0 }
 0x296   : > { %2118 = vmatpush1.bf16.msra.mxu1 %v2117_v46  ;;  %v1288_v14 = vsel %vm473_vm8, %v2458_v31, %v2459_v29  ;;  %v1287_v42 = vsel %vm473_vm8, %v2464_v37, %v2458_v31 }
 0x297   : > { %v3214_v62 = vpop.permute.xlu0 %2466  ;;  %v2492_v2 = vpop.permute.xlu1 %2491  ;;  %2120 = vmatprep.subr.bf16.mxu1 %v2119_v53  ;;  %v2139_v41 = vpack.c.bf16 %v1288_v14, %v1286_v11 }
 0x298   : > { %v2494_v63 = vunpack.i.h.bf16 %v2492_v2  ;;  %v2493_v3 = vunpack.i.l.bf16 %v2492_v2  ;;  %v2469_v21 = vunpack.i.h.bf16 %v3214_v62  ;;  %v2468_v33 = vunpack.i.l.bf16 %v3214_v62 }
 0x29a   : > { %2122 = vmatpush1.bf16.msra.mxu1 %v2121_v12  ;;  %v1184_v22 = vsel %vm1176_vm3, %v2493_v3, %v2494_v63  ;;  %v1183_v28 = vsel %vm1176_vm3, %v2449_v10, %v2493_v3  ;;  %v1290_v23 = vsel %vm473_vm8, %v2468_v33, %v2469_v21 }
 0x29b   : > { %v2472_v61 = vpop.permute.xlu0 %2471  ;;  %v3222_v25 = vpop.permute.xlu1 %2496  ;;  %2124 = vmatprep.subr.bf16.mxu1 %v2123_v16  ;;  %v2127_v4 = vpack.c.bf16 %v1184_v22, %v1182_v51  ;;  %v2129_v15 = vpack.c.bf16 %v1183_v28, %v1181_v7 }
 0x29c   : > { %v2474_v13 = vunpack.i.h.bf16 %v2472_v61  ;;  %v2473_v27 = vunpack.i.l.bf16 %v2472_v61  ;;  %v2499_v50 = vunpack.i.h.bf16 %v3222_v25  ;;  %v2498_v53 = vunpack.i.l.bf16 %v3222_v25 }
 0x29e   : > { %2126 = vmatpush1.bf16.msra.mxu1 %v2125_v26  ;;  %v1289_v20 = vsel %vm473_vm8, %v2473_v27, %v2468_v33 }
 0x29f   : > { %v3226_v5 = vpop.permute.xlu0 %2486  ;;  %v3228_v30 = vpop.permute.xlu1 %2511  ;;  %2128 = vmatprep.subr.bf16.mxu1 %v2127_v4 }
 0x2a0   : > { %v2489_v32 = vunpack.i.h.bf16 %v3226_v5  ;;  %v2488_v52 = vunpack.i.l.bf16 %v3226_v5  ;;  %v2514_v62 = vunpack.i.h.bf16 %v3228_v30  ;;  %v2513_v56 = vunpack.i.l.bf16 %v3228_v30 }
 0x2a2   : > { %2130 = vmatpush1.bf16.msra.mxu1 %v2129_v15  ;;  %v1380_v60 = vsel %vm1030_vm2, %v2488_v52, %v2489_v32  ;;  %v1379_v24 = vsel %vm1030_vm2, %v2499_v50, %v2488_v52 }
 0x2a3   : > { %v3235_v36 = vpop.permute.xlu0 %2501  ;;  %v3237_v19 = vpop.permute.xlu1 %2521  ;;  %2132 = vmatprep.subr.bf16.mxu1 %v2131_v54 }
 0x2a4   : > { %v2504_v2 = vunpack.i.h.bf16 %v3235_v36  ;;  %v2503_v49 = vunpack.i.l.bf16 %v3235_v36  ;;  %v2524_v36 = vunpack.i.h.bf16 %v3237_v19 }
 0x2a6   : > { %2134 = vmatpush1.bf16.msra.mxu1 %v2133_v55  ;;  %v2483_v55 = vunpack.i.l.bf16 %v3204_v43  ;;  %v1285_v43 = vsel %vm473_vm8, %v2463_v38, %v2453_v34  ;;  %v1382_v34 = vsel %vm1030_vm2, %v2503_v49, %v2504_v2  ;;  %v1450_v38 = vsel %vm539_vm11, %v2513_v56, %v2514_v62 }
 0x2a7   : > { %v3249_v39 = vpop.permute.xlu0 %2506  ;;  %v2532_v40 = vpop.permute.xlu1 %2531  ;;  %2136 = vmatprep.subr.bf16.mxu1 %v2135_v57  ;;  %v2141_v46 = vpack.c.bf16 %v1287_v42, %v1285_v43 }
 0x2a8   : > { %v2534_v35 = vunpack.i.h.bf16 %v2532_v40  ;;  %v2533_v54 = vunpack.i.l.bf16 %v2532_v40  ;;  %v1378_v48 = vsel %vm1030_vm2, %v2483_v55, %v2484_v45  ;;  %v2509_v4 = vunpack.i.h.bf16 %v3249_v39 }
 0x2a9   : > { %v2147_v10 = vpack.c.bf16 %v1380_v60, %v1378_v48  ;;  %v2508_v28 = vunpack.i.l.bf16 %v3249_v39  ;;  %v1377_v15 = vsel %vm1030_vm2, %v2498_v53, %v2483_v55  ;;  %v2523_v45 = vunpack.i.l.bf16 %v3237_v19 }
 0x2aa   : > { %2138 = vmatpush1.bf16.msra.mxu1 %v2137_v58  ;;  %v1292_v17 = vsel %vm473_vm8, %v2533_v54, %v2534_v35  ;;  %v1291_v47 = vsel %vm473_vm8, %v2474_v13, %v2533_v54  ;;  %v2149_v0 = vpack.c.bf16 %v1379_v24, %v1377_v15  ;;  %v1572_v24 = vld [vmem:[%s3383_s6 + $0x38] sm:$0xff] }
 0x2ab   : > { %v3265_v57 = vpop.permute.xlu0 %2516  ;;  %v2537_v44 = vpop.permute.xlu1 %2536  ;;  %2140 = vmatprep.subr.bf16.mxu1 %v2139_v41  ;;  %v2143_v59 = vpack.c.bf16 %v1292_v17, %v1290_v23  ;;  %v2145_v63 = vpack.c.bf16 %v1291_v47, %v1289_v20  ;;  %v1381_v13 = vsel %vm1030_vm2, %v2508_v28, %v2503_v49  ;;  %v1576_v28 = vld [vmem:[%s3383_s6 + $0x58] sm:$0xff] }
 0x2ac   : > { %v2539_v9 = vunpack.i.h.bf16 %v2537_v44  ;;  %v2538_v58 = vunpack.i.l.bf16 %v2537_v44  ;;  %v2519_v22 = vunpack.i.h.bf16 %v3265_v57  ;;  %v2518_v61 = vunpack.i.l.bf16 %v3265_v57 }
 0x2ad   : > { %v1449_v57 = vsel %vm539_vm11, %v2523_v45, %v2513_v56  ;;  %v1569_v56 = vld [vmem:[%s3383_s6 + $0x20] sm:$0xff] }
 0x2ae   : > { %2142 = vmatpush1.bf16.msra.mxu1 %v2141_v46  ;;  %v1544_v26 = vsel %vm558_vm12, %v2538_v58, %v2539_v9  ;;  %v1452_v11 = vsel %vm539_vm11, %v2518_v61, %v2519_v22  ;;  %v1451_v19 = vsel %vm539_vm11, %v2524_v36, %v2518_v61  ;;  %v1567_v22 = vld [vmem:[%s3383_s6 + $0x10] sm:$0xff]  ;;  %v1570_v61 = vld [vmem:[%s3383_s6 + $0x28] sm:$0xff] }
 0x2af   : > { %v2527_v6 = vpop.permute.xlu0 %2526  ;;  %v2547_v8 = vpop.permute.xlu1 %2546  ;;  %2144 = vmatprep.subr.bf16.mxu1 %v2143_v59  ;;  %v2155_v17 = vpack.c.bf16 %v1452_v11, %v1450_v38  ;;  %v2157_v23 = vpack.c.bf16 %v1451_v19, %v1449_v57 }
 0x2b0   : > { %v2529_v3 = vunpack.i.h.bf16 %v2527_v6  ;;  %v2528_v12 = vunpack.i.l.bf16 %v2527_v6  ;;  %v2549_v16 = vunpack.i.h.bf16 %v2547_v8  ;;  %v2548_v18 = vunpack.i.l.bf16 %v2547_v8 }
 0x2b2   : > { %2146 = vmatpush1.bf16.msra.mxu1 %v2145_v63  ;;  %v1542_v25 = vsel %vm558_vm12, %v2528_v12, %v2529_v3  ;;  %v1384_v51 = vsel %vm1030_vm2, %v2548_v18, %v2549_v16  ;;  %v1383_v37 = vsel %vm1030_vm2, %v2509_v4, %v2548_v18  ;;  %v1565_v16 = vld [vmem:[%s3383_s6] sm:$0xff]  ;;  %v1574_v4 = vld [vmem:[%s3383_s6 + $0x48] sm:$0xff] }
 0x2b3   : > { %v2542_v5 = vpop.permute.xlu0 %2541  ;;  %v2552_v30 = vpop.permute.xlu1 %2551  ;;  %2148 = vmatprep.subr.bf16.mxu1 %v2147_v10  ;;  %v2163_v7 = vpack.c.bf16 %v1544_v26, %v1542_v25  ;;  %v2151_v14 = vpack.c.bf16 %v1384_v51, %v1382_v34  ;;  %v2153_v27 = vpack.c.bf16 %v1383_v37, %v1381_v13  ;;  %v1568_v10 = vld [vmem:[%s3383_s6 + $0x18] sm:$0xff]  ;;  %v1571_v25 = vld [vmem:[%s3383_s6 + $0x30] sm:$0xff]  ;;  %v1573_v51 = vld [vmem:[%s3383_s6 + $0x40] sm:$0xff] }
 0x2b4   : > { %v2544_v29 = vunpack.i.h.bf16 %v2542_v5  ;;  %v2543_v31 = vunpack.i.l.bf16 %v2542_v5  ;;  %v2554_v33 = vunpack.i.h.bf16 %v2552_v30  ;;  %v2553_v35 = vunpack.i.l.bf16 %v2552_v30  ;;  %v1575_v26 = vld [vmem:[%s3383_s6 + $0x50] sm:$0xff] }
 0x2b5   : > { %2164 = vmatprep.subr.bf16.mxu0 %v2163_v7 }
 0x2b6   : > { %v1541_v39 = vsel %vm558_vm12, %v2543_v31, %v2528_v12  ;;  %v1543_v40 = vsel %vm558_vm12, %v2544_v29, %v2538_v58  ;;  %2150 = vmatpush1.bf16.msra.mxu1 %v2149_v0  ;;  %v1454_v47 = vsel %vm539_vm11, %v2553_v35, %v2554_v33  ;;  %v1864_v0 = vld [vmem:[%s387_s18 + $0x8] sm:$0xff] }
 0x2b7   : > { %v2165_v21 = vpack.c.bf16 %v1543_v40, %v1541_v39  ;;  %v2557_v54 = vpop.permute.xlu0 %2556  ;;  %v2562_v55 = vpop.permute.xlu1 %2561  ;;  %2152 = vmatprep.subr.bf16.mxu1 %v2151_v14  ;;  %v1865_v40 = vld [vmem:[%s387_s18 + $0x10] sm:$0xff] }
 0x2b8   : > { %v2559_v41 = vunpack.i.h.bf16 %v2557_v54  ;;  %v2558_v42 = vunpack.i.l.bf16 %v2557_v54  ;;  %v2564_v32 = vunpack.i.h.bf16 %v2562_v55  ;;  %v2563_v52 = vunpack.i.l.bf16 %v2562_v55 }
 0x2b9   : > { %2166 = vmatpush1.bf16.msra.mxu0 %v2165_v21  ;;  %v1866_v21 = vld [vmem:[%s387_s18 + $0x18] sm:$0xff] }
 0x2ba   : > { %2154 = vmatpush1.bf16.msra.mxu1 %v2153_v27  ;;  %v1456_v44 = vsel %vm539_vm11, %v2558_v42, %v2559_v41  ;;  %v1453_v58 = vsel %vm539_vm11, %v2563_v52, %v2553_v35  ;;  %v1455_v20 = vsel %vm539_vm11, %v2564_v32, %v2558_v42 }
 0x2bb   : > { %v2567_v43 = vpop.permute.xlu0 %2566  ;;  %v2572_v46 = vpop.permute.xlu1 %2571  ;;  %2156 = vmatprep.subr.bf16.mxu1 %v2155_v17  ;;  %v2159_v9 = vpack.c.bf16 %v1456_v44, %v1454_v47  ;;  %v2161_v63 = vpack.c.bf16 %v1455_v20, %v1453_v58 }
 0x2bc   : > { %v2569_v50 = vunpack.i.h.bf16 %v2567_v43  ;;  %v2568_v53 = vunpack.i.l.bf16 %v2567_v43  ;;  %v2574_v59 = vunpack.i.h.bf16 %v2572_v46  ;;  %v2573_v48 = vunpack.i.l.bf16 %v2572_v46 }
 0x2be   : > { %2158 = vmatpush1.bf16.msra.mxu1 %v2157_v23  ;;  %v1546_v60 = vsel %vm558_vm12, %v2568_v53, %v2569_v50  ;;  %v1548_v62 = vsel %vm558_vm12, %v2573_v48, %v2574_v59 }
 0x2bf   : > { %v2577_v2 = vpop.permute.xlu0 %2576  ;;  %2160 = vmatprep.subr.bf16.mxu1 %v2159_v9  ;;  %v2167_v49 = vpack.c.bf16 %v1548_v62, %v1546_v60 }
 0x2c0   : > { %v2579_v6 = vunpack.i.h.bf16 %v2577_v2  ;;  %v2578_v8 = vunpack.i.l.bf16 %v2577_v2 }
 0x2c1   : > { %2168 = vmatprep.subr.bf16.mxu0 %v2167_v49 }
 0x2c2   : > { %v1545_v3 = vsel %vm558_vm12, %v2578_v8, %v2568_v53  ;;  %v1547_v12 = vsel %vm558_vm12, %v2579_v6, %v2573_v48  ;;  %2162 = vmatpush1.bf16.msra.mxu1 %v2161_v63 }
 0x2c3   : > { %v2169_v18 = vpack.c.bf16 %v1547_v12, %v1545_v3 }
 0x2c5   : > { %1750 = vmatmul.mubr.f32.vlgmr.msra.gmra.mrb[0].mxu1 %v1565_v16  ;;  %2170 = vmatpush1.bf16.msra.mxu0 %v2169_v18 }
 0x2c6   : > { %1755 = vmatprep.mubr.f32.mxu1 %v1569_v56 }
 0x2c8   : > { %2075 = vmatmul.mubr.msk.f32.vlgmr.msra.gmra.mrb[8].mxu0 %vm603_vm6, %v1567_v22 }
 0x2c9   : > { %1756 = vmatmul.mubr.f32.gmra.mrb[2].mxu1 %v1568_v10  ;;  %1844 = vmatprep.mubr.f32.mxu0 %v2620_v1 }
 0x2ca   : > { %1761 = vmatprep.mubr.f32.mxu1 %v1572_v24 }
 0x2cc   : > { %2076 = vmatmul.mubr.msk.f32.gmra.mrb[10].mxu0 %vm603_vm6, %v1570_v61  ;;  %v1656_v5 = vpop.permute.xlu1 %1655 }
 0x2cd   : > { %1762 = vmatmul.mubr.f32.gmra.mrb[4].mxu1 %v1571_v25  ;;  %1850 = vmatprep.mubr.f32.mxu0 %v2620_v1 }
 0x2ce   : > { %1767 = vmatprep.mubr.f32.mxu1 %v1575_v26 }
 0x2d0   : > { %2077 = vmatmul.mubr.msk.f32.gmra.mrb[12].mxu0 %vm603_vm6, %v1573_v51  ;;  %v1661_v30 = vpop.permute.xlu0 %1660  ;;  %v1872_v7 = vpop.permute.xlu1 %1871 }
 0x2d1   : > { %1768 = vmatmul.mubr.f32.gmra.mrb[6].mxu1 %v1574_v4  ;;  %1856 = vmatprep.mubr.f32.mxu0 %v2620_v1  ;;  %v1863_v1 = vld [vmem:[%s387_s18] sm:$0xff]  ;;  %v1880_v39 = vmul.f32 %v1872_v7, %v1864_v0 }
 0x2d2   : > { %v1879_v38 = vmul.f32 %v1872_v7, %v1863_v1 }
 0x2d4   : > { %2078 = vmatmul.mubr.msk.f32.gmra.mrb[14].mxu0 %vm603_vm6, %v1576_v28  ;;  %v1877_v15 = vpop.permute.xlu0 %1876  ;;  %v1666_v29 = vpop.permute.xlu1 %1665 }
 0x2d5   : > { %v1881_v32 = vmul.f32 %v1877_v15, %v1865_v40  ;;  %v1882_v57 = vmul.f32 %v1877_v15, %v1866_v21 }
 0x2d8   : > { %v1671_v31 = vpop.permute.xlu0 %1670  ;;  %v1888_v36 = vpop.permute.xlu1 %1887 }
 0x2d9   : > { %v1895_v33 = vadd.f32 %v1888_v36, %v1879_v38  ;;  %v1896_v13 = vadd.f32 %v1888_v36, %v1880_v39 }
 0x2dc   : > { %v1893_v41 = vpop.permute.xlu0 %1892 }
 0x2dd   : > { %v1897_v46 = vadd.f32 %v1893_v41, %v1881_v32  ;;  %v1898_v53 = vadd.f32 %v1893_v41, %v1882_v57 }
 0x398   : > { %v1751_v34 = vpop.f32.mrb[0].mxu1 }
 0x399   : > { %v1752_v14 = vadd.f32 %v1751_v34, %v1656_v5  ;;  %v1753_v37 = vpop.f32.mrb[1].mxu1 }
 0x39a   : > { %v1754_v45 = vadd.f32 %v1753_v37, %v1656_v5 }
 0x39b   : > { %v1840_v11 = vpop.f32.mrb[8].mxu0 }
 0x39c   : > { %v1841_v35 = vadd.f32 %v1840_v11, %v1752_v14  ;;  %v1757_v54 = vpop.f32.mrb[2].mxu1  ;;  %v1842_v55 = vpop.f32.mrb[9].mxu0 }
 0x39d   : > { %v1758_v42 = vadd.f32 %v1757_v54, %v1661_v30  ;;  %v1843_v27 = vadd.f32 %v1842_v55, %v1754_v45  ;;  %v1759_v19 = vpop.f32.mrb[3].mxu1 }
 0x39e   : > { %v1899_v52 = vmul.f32 %v1895_v33, %v1841_v35  ;;  %v1760_v17 = vadd.f32 %v1759_v19, %v1661_v30 }
 0x39f   : > { %v1900_v44 = vmul.f32 %v1896_v13, %v1843_v27  ;;  %v1846_v43 = vpop.f32.mrb[10].mxu0 }
 0x3a0   : > { %v1847_v23 = vadd.f32 %v1846_v43, %v1758_v42  ;;  %v1763_v47 = vpop.f32.mrb[4].mxu1  ;;  %v1848_v50 = vpop.f32.mrb[11].mxu0 }
 0x3a1   : > { %v1764_v59 = vadd.f32 %v1763_v47, %v1666_v29  ;;  %v1849_v48 = vadd.f32 %v1848_v50, %v1760_v17  ;;  %v1765_v9 = vpop.f32.mrb[5].mxu1 }
 0x3a2   : > { %v1901_v58 = vmul.f32 %v1897_v46, %v1847_v23  ;;  %v1766_v20 = vadd.f32 %v1765_v9, %v1666_v29 }
 0x3a3   : > { %v1902_v60 = vmul.f32 %v1898_v53, %v1849_v48  ;;  %v1852_v62 = vpop.f32.mrb[12].mxu0 }
 0x3a4   : > { %v1853_v2 = vadd.f32 %v1852_v62, %v1764_v59  ;;  %v1769_v49 = vpop.f32.mrb[6].mxu1  ;;  %v1854_v6 = vpop.f32.mrb[13].mxu0 }
 0x3a5   : > { %v1770_v8 = vadd.f32 %v1769_v49, %v1671_v31  ;;  %v1855_v63 = vadd.f32 %v1854_v6, %v1766_v20  ;;  %v1771_v3 = vpop.f32.mrb[7].mxu1 }
 0x3a6   : > { %v1903_v12 = vadd.f32 %v1899_v52, %v1853_v2  ;;  %v1772_v16 = vadd.f32 %v1771_v3, %v1671_v31 }
 0x3a7   : > { %v1904_v18 = vadd.f32 %v1900_v44, %v1855_v63  ;;  %v1858_v56 = vpop.f32.mrb[14].mxu0 }
 0x3a8   : > { %1907 = vst [vmem:[%s415_s25] sm:$0xff] %v1903_v12  ;;  %v1859_v22 = vadd.f32 %v1858_v56, %v1770_v8  ;;  %v1860_v10 = vpop.f32.mrb[15].mxu0 }
 0x3a9   : > { %1908 = vst [vmem:[%s415_s25 + $0x8] sm:$0xff] %v1904_v18  ;;  %v1861_v24 = vadd.f32 %v1860_v10, %v1772_v16 }
 0x3aa   : > { %v1905_v61 = vadd.f32 %v1901_v58, %v1859_v22 }
 0x3ab   : > { %v1906_v25 = vadd.f32 %v1902_v60, %v1861_v24 }
 0x3ac   : > { %1909 = vst [vmem:[%s415_s25 + $0x10] sm:$0xff] %v1905_v61 }
 0x3ad   : > { %1910 = vst [vmem:[%s415_s25 + $0x18] sm:$0xff] %v1906_v25 }
 0x3ae PF: > { %s18_s9 = sadd.s32 1, %s2618_s9   ;;  %s3386_s27 = smov %s2610_s29 }
 0x3af   : > { %p15_p7 = scmp.ge.s32.totalorder %s18_s9, 10   ;;  %s3387_s28 = smov %s2614_s30 }
 0x3b0   : > { %s3388_s29 = smov %s3391_s10  ;;  %s3389_s30 = smov %s3395_s11 }
 0x3b1   :  { %17 = sbr.rel (!%p15_p7) target bundleno = 3 (0x3), region = 91 }

</bundles_post_ra>
